<compile_context>
chip_gen: v7x
topology: tpu7x:2x2x1
jax: 0.10.0
libtpu: 0.0.40
codegen_flags: <defaults>
</compile_context>

<pallas_src>
import jax
import jax.numpy as jnp
from jax import lax
from jax.experimental import pallas as pl
from jax.experimental.pallas import tpu as pltpu

EMBEDDING_DIM = 16


def _contentwords_kernel(ids_ref, embg_ref, whh_ref, bg_ref, wout_ref, bout_ref, out_ref):
    T = ids_ref.shape[0]
    V = embg_ref.shape[0]
    H = whh_ref.shape[0]

    # ---- Fused embedding + input projection for the whole sequence: one MXU pass ----
    col = lax.broadcasted_iota(jnp.int32, (T, V), 1)                      # (T, V) lane ids
    onehot = (col == ids_ref[...]).astype(jnp.bfloat16)                   # (T, V) one-hot
    x_proj = jnp.dot(onehot, embg_ref[...],
                     preferred_element_type=jnp.float32) + bg_ref[...]    # (T, 4H) f32

    # ---- init_hidden(): zero h, c (batch == 1, as in the PyTorch module) ----
    h = jnp.zeros((1, H), jnp.float32)
    c = jnp.zeros((1, H), jnp.float32)

    # ---- Serial LSTM recurrence; gate order is [i, f, o, g] (pre-permuted weights) ----
    for t in range(T):                                                    # static unroll
        gates = x_proj[t:t + 1, :] + jnp.dot(
            h.astype(jnp.bfloat16), whh_ref[...],
            preferred_element_type=jnp.float32)                           # (1, 4H) f32
        sig = jax.nn.sigmoid(gates[:, 0:3 * H])                           # i, f, o together
        g_g = jnp.tanh(gates[:, 3 * H:4 * H])
        i_g = sig[:, 0:H]
        f_g = sig[:, H:2 * H]
        o_g = sig[:, 2 * H:3 * H]
        c = f_g * c + i_g * g_g
        h = o_g * jnp.tanh(c)

    # ---- hidden_layer(lstm_out[-1]): Linear on the final hidden state ----
    logits = jnp.dot(h.astype(jnp.bfloat16), wout_ref[...],
                     preferred_element_type=jnp.float32) + bout_ref[...]  # (1, C) f32

    # ---- LogSoftmax over dim=1 ----
    m = jnp.max(logits, axis=-1, keepdims=True)
    lse = m + jnp.log(jnp.sum(jnp.exp(logits - m), axis=-1, keepdims=True))
    out_ref[...] = logits - lse


def contentwords_forward(inputs, params):
    """inputs: int32 (T,) token ids. Returns (1, cw_set_size) log-probabilities."""
    emb_gates, w_hh_t, b_gates, w_out_t, b_out = params
    C = w_out_t.shape[1]
    ids_col = inputs.astype(jnp.int32).reshape(-1, 1)   # (T, 1) for in-kernel one-hot

    vmem = pl.BlockSpec(memory_space=pltpu.MemorySpace.VMEM)
    return pl.pallas_call(
        _contentwords_kernel,
        out_shape=jax.ShapeDtypeStruct((1, C), jnp.float32),
        in_specs=[vmem,   # token ids (T, 1) int32
                  vmem,   # fused embedding->gates table (V, 4H) bf16
                  vmem,   # W_hh^T (H, 4H) bf16
                  vmem,   # b_ih + b_hh (1, 4H) f32
                  vmem,   # W_out^T (H, C) bf16
                  vmem],  # b_out (1, C) f32
        out_specs=vmem,
    )(ids_col, emb_gates, w_hh_t, b_gates, w_out_t, b_out)


def _permute_gate_rows(w, H):
    """Reorder torch LSTM gate blocks [i, f, g, o] -> [i, f, o, g] along axis 0."""
    return jnp.concatenate([w[0:H], w[H:2 * H], w[3 * H:4 * H], w[2 * H:3 * H]], axis=0)


def init_params(key, set_size, cw_set_size, hidden_dim):
    """Deterministic synthetic parameters, PyTorch-style uniform(-1/sqrt(H), 1/sqrt(H)).

    The embedding table is folded into the LSTM input projection (emb @ W_ih^T) to give a
    single (V, 4H) lookup table, gate blocks are permuted to [i, f, o, g], weights are
    pre-transposed for (rows, in) @ (in, out) matmuls and cast to bfloat16 (MXU-native);
    biases stay float32.
    """
    ks = jax.random.split(key, 7)
    E, H, C = EMBEDDING_DIM, hidden_dim, cw_set_size
    s = 1.0 / jnp.sqrt(jnp.float32(H))
    emb = jax.random.normal(ks[0], (set_size, E), jnp.float32)
    w_ih = jax.random.uniform(ks[1], (4 * H, E), jnp.float32, -s, s)   # torch layout (4H, E)
    w_hh = jax.random.uniform(ks[2], (4 * H, H), jnp.float32, -s, s)
    b_ih = jax.random.uniform(ks[3], (4 * H,), jnp.float32, -s, s)
    b_hh = jax.random.uniform(ks[4], (4 * H,), jnp.float32, -s, s)
    w_out = jax.random.uniform(ks[5], (C, H), jnp.float32, -s, s)
    b_out = jax.random.uniform(ks[6], (C,), jnp.float32, -s, s)

    w_ih_p = _permute_gate_rows(w_ih, H)                               # (4H, E), [i,f,o,g]
    w_hh_p = _permute_gate_rows(w_hh, H)                               # (4H, H)
    b_p = _permute_gate_rows((b_ih + b_hh).reshape(4 * H, 1), H).reshape(1, 4 * H)

    emb_gates = jnp.dot(emb, w_ih_p.T)                                 # (V, 4H) fused table
    return (emb_gates.astype(jnp.bfloat16),
            w_hh_p.T.astype(jnp.bfloat16),
            b_p.astype(jnp.float32),
            w_out.T.astype(jnp.bfloat16),
            b_out.reshape(1, C).astype(jnp.float32))


def reference_forward(inputs, params):
    """Pure-JAX reference mirroring the kernel's numerics (bf16 weights, f32 state)."""
    emb_gates, w_hh_t, b_gates, w_out_t, b_out = params
    H = w_hh_t.shape[0]
    x_proj = emb_gates[inputs].astype(jnp.float32) + b_gates           # (T, 4H)
    h = jnp.zeros((1, H), jnp.float32)
    c = jnp.zeros((1, H), jnp.float32)
    for t in range(x_proj.shape[0]):
        gates = x_proj[t:t + 1, :] + jnp.dot(
            h.astype(jnp.bfloat16), w_hh_t, preferred_element_type=jnp.float32)
        i_g = jax.nn.sigmoid(gates[:, 0:H])
        f_g = jax.nn.sigmoid(gates[:, H:2 * H])
        o_g = jax.nn.sigmoid(gates[:, 2 * H:3 * H])
        g_g = jnp.tanh(gates[:, 3 * H:4 * H])
        c = f_g * c + i_g * g_g
        h = o_g * jnp.tanh(c)
    logits = jnp.dot(h.astype(jnp.bfloat16), w_out_t,
                     preferred_element_type=jnp.float32) + b_out
    return jax.nn.log_softmax(logits, axis=1)


if __name__ == "__main__":
    SET_SIZE = 64        # vocabulary size
    CW_SET_SIZE = 128    # content-word vocabulary size (output classes)
    HIDDEN_DIM = 128     # small stand-in for the module's 256
    SEQ_LEN = 8

    key = jax.random.PRNGKey(0)
    k_par, k_inp = jax.random.split(key)
    params = init_params(k_par, SET_SIZE, CW_SET_SIZE, HIDDEN_DIM)
    inputs = jax.random.randint(k_inp, (SEQ_LEN,), 0, SET_SIZE, dtype=jnp.int32)

    out = contentwords_forward(inputs, params)
    out = jax.block_until_ready(out)

    ref = reference_forward(inputs, params)
    assert out.shape == (1, CW_SET_SIZE)
    assert bool(jnp.allclose(out, ref, atol=2e-3, rtol=2e-3)), "mismatch vs pure-JAX reference"

    print("KERNEL_OK")
</pallas_src>

<mosaic_0001>
module attributes {stable_mosaic.version = 11 : i64} {
  func.func @_contentwords_kernel(%arg0: memref<8x1xi32, #tpu.memory_space<vmem>>, %arg1: memref<64x512xbf16, #tpu.memory_space<vmem>>, %arg2: memref<128x512xbf16, #tpu.memory_space<vmem>>, %arg3: memref<1x512xf32, #tpu.memory_space<vmem>>, %arg4: memref<128x128xbf16, #tpu.memory_space<vmem>>, %arg5: memref<1x128xf32, #tpu.memory_space<vmem>>, %arg6: memref<1x128xf32, #tpu.memory_space<vmem>>) attributes {dimension_semantics = [], scalar_prefetch = 0 : i64, scratch_operands = 0 : i64, tpu.core_type = #tpu.core_type<tc>} {
    %0 = tpu.iota {dimensions = array<i32: 1>} : vector<8x64xi32>
    %c0 = arith.constant 0 : index
    %c0_0 = arith.constant 0 : index
    %1 = vector.load %arg0[%c0, %c0_0] : memref<8x1xi32, #tpu.memory_space<vmem>>, vector<8x1xi32>
    %2 = vector.broadcast %1 : vector<8x1xi32> to vector<8x64xi32>
    %3 = arith.cmpi eq, %0, %2 : vector<8x64xi32>
    %4 = arith.extui %3 : vector<8x64xi1> to vector<8x64xi32>
    %5 = arith.sitofp %4 : vector<8x64xi32> to vector<8x64xf32>
    %6 = arith.truncf %5 : vector<8x64xf32> to vector<8x64xbf16>
    %c0_1 = arith.constant 0 : index
    %c0_2 = arith.constant 0 : index
    %7 = vector.load %arg1[%c0_1, %c0_2] : memref<64x512xbf16, #tpu.memory_space<vmem>>, vector<64x512xbf16>
    %cst = arith.constant dense<0.000000e+00> : vector<8x512xf32>
    %8 = tpu.matmul %6, %7, %cst {dimension_numbers = #tpu.dot_dimension_numbers<[1], [0], [0], [1], [0, 0, 1, 1], [], []>} : vector<8x64xbf16>, vector<64x512xbf16>, vector<8x512xf32> -> vector<8x512xf32>
    %c0_3 = arith.constant 0 : index
    %c0_4 = arith.constant 0 : index
    %9 = vector.load %arg3[%c0_3, %c0_4] : memref<1x512xf32, #tpu.memory_space<vmem>>, vector<1x512xf32>
    %10 = vector.broadcast %9 : vector<1x512xf32> to vector<8x512xf32>
    %11 = arith.addf %8, %10 : vector<8x512xf32>
    %cst_5 = arith.constant 0.000000e+00 : f32
    %12 = vector.broadcast %cst_5 : f32 to vector<1x128xf32>
    %cst_6 = arith.constant 0.000000e+00 : f32
    %13 = vector.broadcast %cst_6 : f32 to vector<1x128xf32>
    %14 = vector.extract_strided_slice %11 {offsets = [0, 0], sizes = [1, 512], strides = [1, 1]} : vector<8x512xf32> to vector<1x512xf32>
    %15 = arith.truncf %12 : vector<1x128xf32> to vector<1x128xbf16>
    %c0_7 = arith.constant 0 : index
    %c0_8 = arith.constant 0 : index
    %16 = vector.load %arg2[%c0_7, %c0_8] : memref<128x512xbf16, #tpu.memory_space<vmem>>, vector<128x512xbf16>
    %cst_9 = arith.constant dense<0.000000e+00> : vector<1x512xf32>
    %17 = tpu.matmul %15, %16, %cst_9 {dimension_numbers = #tpu.dot_dimension_numbers<[1], [0], [0], [1], [0, 0, 1, 1], [], []>} : vector<1x128xbf16>, vector<128x512xbf16>, vector<1x512xf32> -> vector<1x512xf32>
    %18 = arith.addf %14, %17 : vector<1x512xf32>
    %19 = vector.extract_strided_slice %18 {offsets = [0, 0], sizes = [1, 384], strides = [1, 1]} : vector<1x512xf32> to vector<1x384xf32>
    %20 = arith.negf %19 : vector<1x384xf32>
    %21 = math.exp %20 : vector<1x384xf32>
    %cst_10 = arith.constant 1.000000e+00 : f32
    %22 = vector.broadcast %cst_10 : f32 to vector<1x384xf32>
    %23 = arith.addf %22, %21 : vector<1x384xf32>
    %24 = arith.divf %22, %23 : vector<1x384xf32>
    %25 = vector.extract_strided_slice %18 {offsets = [0, 384], sizes = [1, 128], strides = [1, 1]} : vector<1x512xf32> to vector<1x128xf32>
    %26 = math.tanh %25 : vector<1x128xf32>
    %27 = vector.extract_strided_slice %24 {offsets = [0, 0], sizes = [1, 128], strides = [1, 1]} : vector<1x384xf32> to vector<1x128xf32>
    %28 = vector.extract_strided_slice %24 {offsets = [0, 128], sizes = [1, 128], strides = [1, 1]} : vector<1x384xf32> to vector<1x128xf32>
    %29 = vector.extract_strided_slice %24 {offsets = [0, 256], sizes = [1, 128], strides = [1, 1]} : vector<1x384xf32> to vector<1x128xf32>
    %30 = arith.mulf %28, %13 : vector<1x128xf32>
    %31 = arith.mulf %27, %26 : vector<1x128xf32>
    %32 = arith.addf %30, %31 : vector<1x128xf32>
    %33 = math.tanh %32 : vector<1x128xf32>
    %34 = arith.mulf %29, %33 : vector<1x128xf32>
    %35 = vector.extract_strided_slice %11 {offsets = [1, 0], sizes = [1, 512], strides = [1, 1]} : vector<8x512xf32> to vector<1x512xf32>
    %36 = arith.truncf %34 : vector<1x128xf32> to vector<1x128xbf16>
    %c0_11 = arith.constant 0 : index
    %c0_12 = arith.constant 0 : index
    %37 = vector.load %arg2[%c0_11, %c0_12] : memref<128x512xbf16, #tpu.memory_space<vmem>>, vector<128x512xbf16>
    %cst_13 = arith.constant dense<0.000000e+00> : vector<1x512xf32>
    %38 = tpu.matmul %36, %37, %cst_13 {dimension_numbers = #tpu.dot_dimension_numbers<[1], [0], [0], [1], [0, 0, 1, 1], [], []>} : vector<1x128xbf16>, vector<128x512xbf16>, vector<1x512xf32> -> vector<1x512xf32>
    %39 = arith.addf %35, %38 : vector<1x512xf32>
    %40 = vector.extract_strided_slice %39 {offsets = [0, 0], sizes = [1, 384], strides = [1, 1]} : vector<1x512xf32> to vector<1x384xf32>
    %41 = arith.negf %40 : vector<1x384xf32>
    %42 = math.exp %41 : vector<1x384xf32>
    %cst_14 = arith.constant 1.000000e+00 : f32
    %43 = vector.broadcast %cst_14 : f32 to vector<1x384xf32>
    %44 = arith.addf %43, %42 : vector<1x384xf32>
    %45 = arith.divf %43, %44 : vector<1x384xf32>
    %46 = vector.extract_strided_slice %39 {offsets = [0, 384], sizes = [1, 128], strides = [1, 1]} : vector<1x512xf32> to vector<1x128xf32>
    %47 = math.tanh %46 : vector<1x128xf32>
    %48 = vector.extract_strided_slice %45 {offsets = [0, 0], sizes = [1, 128], strides = [1, 1]} : vector<1x384xf32> to vector<1x128xf32>
    %49 = vector.extract_strided_slice %45 {offsets = [0, 128], sizes = [1, 128], strides = [1, 1]} : vector<1x384xf32> to vector<1x128xf32>
    %50 = vector.extract_strided_slice %45 {offsets = [0, 256], sizes = [1, 128], strides = [1, 1]} : vector<1x384xf32> to vector<1x128xf32>
    %51 = arith.mulf %49, %32 : vector<1x128xf32>
    %52 = arith.mulf %48, %47 : vector<1x128xf32>
    %53 = arith.addf %51, %52 : vector<1x128xf32>
    %54 = math.tanh %53 : vector<1x128xf32>
    %55 = arith.mulf %50, %54 : vector<1x128xf32>
    %56 = vector.extract_strided_slice %11 {offsets = [2, 0], sizes = [1, 512], strides = [1, 1]} : vector<8x512xf32> to vector<1x512xf32>
    %57 = arith.truncf %55 : vector<1x128xf32> to vector<1x128xbf16>
    %c0_15 = arith.constant 0 : index
    %c0_16 = arith.constant 0 : index
    %58 = vector.load %arg2[%c0_15, %c0_16] : memref<128x512xbf16, #tpu.memory_space<vmem>>, vector<128x512xbf16>
    %cst_17 = arith.constant dense<0.000000e+00> : vector<1x512xf32>
    %59 = tpu.matmul %57, %58, %cst_17 {dimension_numbers = #tpu.dot_dimension_numbers<[1], [0], [0], [1], [0, 0, 1, 1], [], []>} : vector<1x128xbf16>, vector<128x512xbf16>, vector<1x512xf32> -> vector<1x512xf32>
    %60 = arith.addf %56, %59 : vector<1x512xf32>
    %61 = vector.extract_strided_slice %60 {offsets = [0, 0], sizes = [1, 384], strides = [1, 1]} : vector<1x512xf32> to vector<1x384xf32>
    %62 = arith.negf %61 : vector<1x384xf32>
    %63 = math.exp %62 : vector<1x384xf32>
    %cst_18 = arith.constant 1.000000e+00 : f32
    %64 = vector.broadcast %cst_18 : f32 to vector<1x384xf32>
    %65 = arith.addf %64, %63 : vector<1x384xf32>
    %66 = arith.divf %64, %65 : vector<1x384xf32>
    %67 = vector.extract_strided_slice %60 {offsets = [0, 384], sizes = [1, 128], strides = [1, 1]} : vector<1x512xf32> to vector<1x128xf32>
    %68 = math.tanh %67 : vector<1x128xf32>
    %69 = vector.extract_strided_slice %66 {offsets = [0, 0], sizes = [1, 128], strides = [1, 1]} : vector<1x384xf32> to vector<1x128xf32>
    %70 = vector.extract_strided_slice %66 {offsets = [0, 128], sizes = [1, 128], strides = [1, 1]} : vector<1x384xf32> to vector<1x128xf32>
    %71 = vector.extract_strided_slice %66 {offsets = [0, 256], sizes = [1, 128], strides = [1, 1]} : vector<1x384xf32> to vector<1x128xf32>
    %72 = arith.mulf %70, %53 : vector<1x128xf32>
    %73 = arith.mulf %69, %68 : vector<1x128xf32>
    %74 = arith.addf %72, %73 : vector<1x128xf32>
    %75 = math.tanh %74 : vector<1x128xf32>
    %76 = arith.mulf %71, %75 : vector<1x128xf32>
    %77 = vector.extract_strided_slice %11 {offsets = [3, 0], sizes = [1, 512], strides = [1, 1]} : vector<8x512xf32> to vector<1x512xf32>
    %78 = arith.truncf %76 : vector<1x128xf32> to vector<1x128xbf16>
    %c0_19 = arith.constant 0 : index
    %c0_20 = arith.constant 0 : index
    %79 = vector.load %arg2[%c0_19, %c0_20] : memref<128x512xbf16, #tpu.memory_space<vmem>>, vector<128x512xbf16>
    %cst_21 = arith.constant dense<0.000000e+00> : vector<1x512xf32>
    %80 = tpu.matmul %78, %79, %cst_21 {dimension_numbers = #tpu.dot_dimension_numbers<[1], [0], [0], [1], [0, 0, 1, 1], [], []>} : vector<1x128xbf16>, vector<128x512xbf16>, vector<1x512xf32> -> vector<1x512xf32>
    %81 = arith.addf %77, %80 : vector<1x512xf32>
    %82 = vector.extract_strided_slice %81 {offsets = [0, 0], sizes = [1, 384], strides = [1, 1]} : vector<1x512xf32> to vector<1x384xf32>
    %83 = arith.negf %82 : vector<1x384xf32>
    %84 = math.exp %83 : vector<1x384xf32>
    %cst_22 = arith.constant 1.000000e+00 : f32
    %85 = vector.broadcast %cst_22 : f32 to vector<1x384xf32>
    %86 = arith.addf %85, %84 : vector<1x384xf32>
    %87 = arith.divf %85, %86 : vector<1x384xf32>
    %88 = vector.extract_strided_slice %81 {offsets = [0, 384], sizes = [1, 128], strides = [1, 1]} : vector<1x512xf32> to vector<1x128xf32>
    %89 = math.tanh %88 : vector<1x128xf32>
    %90 = vector.extract_strided_slice %87 {offsets = [0, 0], sizes = [1, 128], strides = [1, 1]} : vector<1x384xf32> to vector<1x128xf32>
    %91 = vector.extract_strided_slice %87 {offsets = [0, 128], sizes = [1, 128], strides = [1, 1]} : vector<1x384xf32> to vector<1x128xf32>
    %92 = vector.extract_strided_slice %87 {offsets = [0, 256], sizes = [1, 128], strides = [1, 1]} : vector<1x384xf32> to vector<1x128xf32>
    %93 = arith.mulf %91, %74 : vector<1x128xf32>
    %94 = arith.mulf %90, %89 : vector<1x128xf32>
    %95 = arith.addf %93, %94 : vector<1x128xf32>
    %96 = math.tanh %95 : vector<1x128xf32>
    %97 = arith.mulf %92, %96 : vector<1x128xf32>
    %98 = vector.extract_strided_slice %11 {offsets = [4, 0], sizes = [1, 512], strides = [1, 1]} : vector<8x512xf32> to vector<1x512xf32>
    %99 = arith.truncf %97 : vector<1x128xf32> to vector<1x128xbf16>
    %c0_23 = arith.constant 0 : index
    %c0_24 = arith.constant 0 : index
    %100 = vector.load %arg2[%c0_23, %c0_24] : memref<128x512xbf16, #tpu.memory_space<vmem>>, vector<128x512xbf16>
    %cst_25 = arith.constant dense<0.000000e+00> : vector<1x512xf32>
    %101 = tpu.matmul %99, %100, %cst_25 {dimension_numbers = #tpu.dot_dimension_numbers<[1], [0], [0], [1], [0, 0, 1, 1], [], []>} : vector<1x128xbf16>, vector<128x512xbf16>, vector<1x512xf32> -> vector<1x512xf32>
    %102 = arith.addf %98, %101 : vector<1x512xf32>
    %103 = vector.extract_strided_slice %102 {offsets = [0, 0], sizes = [1, 384], strides = [1, 1]} : vector<1x512xf32> to vector<1x384xf32>
    %104 = arith.negf %103 : vector<1x384xf32>
    %105 = math.exp %104 : vector<1x384xf32>
    %cst_26 = arith.constant 1.000000e+00 : f32
    %106 = vector.broadcast %cst_26 : f32 to vector<1x384xf32>
    %107 = arith.addf %106, %105 : vector<1x384xf32>
    %108 = arith.divf %106, %107 : vector<1x384xf32>
    %109 = vector.extract_strided_slice %102 {offsets = [0, 384], sizes = [1, 128], strides = [1, 1]} : vector<1x512xf32> to vector<1x128xf32>
    %110 = math.tanh %109 : vector<1x128xf32>
    %111 = vector.extract_strided_slice %108 {offsets = [0, 0], sizes = [1, 128], strides = [1, 1]} : vector<1x384xf32> to vector<1x128xf32>
    %112 = vector.extract_strided_slice %108 {offsets = [0, 128], sizes = [1, 128], strides = [1, 1]} : vector<1x384xf32> to vector<1x128xf32>
    %113 = vector.extract_strided_slice %108 {offsets = [0, 256], sizes = [1, 128], strides = [1, 1]} : vector<1x384xf32> to vector<1x128xf32>
    %114 = arith.mulf %112, %95 : vector<1x128xf32>
    %115 = arith.mulf %111, %110 : vector<1x128xf32>
    %116 = arith.addf %114, %115 : vector<1x128xf32>
    %117 = math.tanh %116 : vector<1x128xf32>
    %118 = arith.mulf %113, %117 : vector<1x128xf32>
    %119 = vector.extract_strided_slice %11 {offsets = [5, 0], sizes = [1, 512], strides = [1, 1]} : vector<8x512xf32> to vector<1x512xf32>
    %120 = arith.truncf %118 : vector<1x128xf32> to vector<1x128xbf16>
    %c0_27 = arith.constant 0 : index
    %c0_28 = arith.constant 0 : index
    %121 = vector.load %arg2[%c0_27, %c0_28] : memref<128x512xbf16, #tpu.memory_space<vmem>>, vector<128x512xbf16>
    %cst_29 = arith.constant dense<0.000000e+00> : vector<1x512xf32>
    %122 = tpu.matmul %120, %121, %cst_29 {dimension_numbers = #tpu.dot_dimension_numbers<[1], [0], [0], [1], [0, 0, 1, 1], [], []>} : vector<1x128xbf16>, vector<128x512xbf16>, vector<1x512xf32> -> vector<1x512xf32>
    %123 = arith.addf %119, %122 : vector<1x512xf32>
    %124 = vector.extract_strided_slice %123 {offsets = [0, 0], sizes = [1, 384], strides = [1, 1]} : vector<1x512xf32> to vector<1x384xf32>
    %125 = arith.negf %124 : vector<1x384xf32>
    %126 = math.exp %125 : vector<1x384xf32>
    %cst_30 = arith.constant 1.000000e+00 : f32
    %127 = vector.broadcast %cst_30 : f32 to vector<1x384xf32>
    %128 = arith.addf %127, %126 : vector<1x384xf32>
    %129 = arith.divf %127, %128 : vector<1x384xf32>
    %130 = vector.extract_strided_slice %123 {offsets = [0, 384], sizes = [1, 128], strides = [1, 1]} : vector<1x512xf32> to vector<1x128xf32>
    %131 = math.tanh %130 : vector<1x128xf32>
    %132 = vector.extract_strided_slice %129 {offsets = [0, 0], sizes = [1, 128], strides = [1, 1]} : vector<1x384xf32> to vector<1x128xf32>
    %133 = vector.extract_strided_slice %129 {offsets = [0, 128], sizes = [1, 128], strides = [1, 1]} : vector<1x384xf32> to vector<1x128xf32>
    %134 = vector.extract_strided_slice %129 {offsets = [0, 256], sizes = [1, 128], strides = [1, 1]} : vector<1x384xf32> to vector<1x128xf32>
    %135 = arith.mulf %133, %116 : vector<1x128xf32>
    %136 = arith.mulf %132, %131 : vector<1x128xf32>
    %137 = arith.addf %135, %136 : vector<1x128xf32>
    %138 = math.tanh %137 : vector<1x128xf32>
    %139 = arith.mulf %134, %138 : vector<1x128xf32>
    %140 = vector.extract_strided_slice %11 {offsets = [6, 0], sizes = [1, 512], strides = [1, 1]} : vector<8x512xf32> to vector<1x512xf32>
    %141 = arith.truncf %139 : vector<1x128xf32> to vector<1x128xbf16>
    %c0_31 = arith.constant 0 : index
    %c0_32 = arith.constant 0 : index
    %142 = vector.load %arg2[%c0_31, %c0_32] : memref<128x512xbf16, #tpu.memory_space<vmem>>, vector<128x512xbf16>
    %cst_33 = arith.constant dense<0.000000e+00> : vector<1x512xf32>
    %143 = tpu.matmul %141, %142, %cst_33 {dimension_numbers = #tpu.dot_dimension_numbers<[1], [0], [0], [1], [0, 0, 1, 1], [], []>} : vector<1x128xbf16>, vector<128x512xbf16>, vector<1x512xf32> -> vector<1x512xf32>
    %144 = arith.addf %140, %143 : vector<1x512xf32>
    %145 = vector.extract_strided_slice %144 {offsets = [0, 0], sizes = [1, 384], strides = [1, 1]} : vector<1x512xf32> to vector<1x384xf32>
    %146 = arith.negf %145 : vector<1x384xf32>
    %147 = math.exp %146 : vector<1x384xf32>
    %cst_34 = arith.constant 1.000000e+00 : f32
    %148 = vector.broadcast %cst_34 : f32 to vector<1x384xf32>
    %149 = arith.addf %148, %147 : vector<1x384xf32>
    %150 = arith.divf %148, %149 : vector<1x384xf32>
    %151 = vector.extract_strided_slice %144 {offsets = [0, 384], sizes = [1, 128], strides = [1, 1]} : vector<1x512xf32> to vector<1x128xf32>
    %152 = math.tanh %151 : vector<1x128xf32>
    %153 = vector.extract_strided_slice %150 {offsets = [0, 0], sizes = [1, 128], strides = [1, 1]} : vector<1x384xf32> to vector<1x128xf32>
    %154 = vector.extract_strided_slice %150 {offsets = [0, 128], sizes = [1, 128], strides = [1, 1]} : vector<1x384xf32> to vector<1x128xf32>
    %155 = vector.extract_strided_slice %150 {offsets = [0, 256], sizes = [1, 128], strides = [1, 1]} : vector<1x384xf32> to vector<1x128xf32>
    %156 = arith.mulf %154, %137 : vector<1x128xf32>
    %157 = arith.mulf %153, %152 : vector<1x128xf32>
    %158 = arith.addf %156, %157 : vector<1x128xf32>
    %159 = math.tanh %158 : vector<1x128xf32>
    %160 = arith.mulf %155, %159 : vector<1x128xf32>
    %161 = vector.extract_strided_slice %11 {offsets = [7, 0], sizes = [1, 512], strides = [1, 1]} : vector<8x512xf32> to vector<1x512xf32>
    %162 = arith.truncf %160 : vector<1x128xf32> to vector<1x128xbf16>
    %c0_35 = arith.constant 0 : index
    %c0_36 = arith.constant 0 : index
    %163 = vector.load %arg2[%c0_35, %c0_36] : memref<128x512xbf16, #tpu.memory_space<vmem>>, vector<128x512xbf16>
    %cst_37 = arith.constant dense<0.000000e+00> : vector<1x512xf32>
    %164 = tpu.matmul %162, %163, %cst_37 {dimension_numbers = #tpu.dot_dimension_numbers<[1], [0], [0], [1], [0, 0, 1, 1], [], []>} : vector<1x128xbf16>, vector<128x512xbf16>, vector<1x512xf32> -> vector<1x512xf32>
    %165 = arith.addf %161, %164 : vector<1x512xf32>
    %166 = vector.extract_strided_slice %165 {offsets = [0, 0], sizes = [1, 384], strides = [1, 1]} : vector<1x512xf32> to vector<1x384xf32>
    %167 = arith.negf %166 : vector<1x384xf32>
    %168 = math.exp %167 : vector<1x384xf32>
    %cst_38 = arith.constant 1.000000e+00 : f32
    %169 = vector.broadcast %cst_38 : f32 to vector<1x384xf32>
    %170 = arith.addf %169, %168 : vector<1x384xf32>
    %171 = arith.divf %169, %170 : vector<1x384xf32>
    %172 = vector.extract_strided_slice %165 {offsets = [0, 384], sizes = [1, 128], strides = [1, 1]} : vector<1x512xf32> to vector<1x128xf32>
    %173 = math.tanh %172 : vector<1x128xf32>
    %174 = vector.extract_strided_slice %171 {offsets = [0, 0], sizes = [1, 128], strides = [1, 1]} : vector<1x384xf32> to vector<1x128xf32>
    %175 = vector.extract_strided_slice %171 {offsets = [0, 128], sizes = [1, 128], strides = [1, 1]} : vector<1x384xf32> to vector<1x128xf32>
    %176 = vector.extract_strided_slice %171 {offsets = [0, 256], sizes = [1, 128], strides = [1, 1]} : vector<1x384xf32> to vector<1x128xf32>
    %177 = arith.mulf %175, %158 : vector<1x128xf32>
    %178 = arith.mulf %174, %173 : vector<1x128xf32>
    %179 = arith.addf %177, %178 : vector<1x128xf32>
    %180 = math.tanh %179 : vector<1x128xf32>
    %181 = arith.mulf %176, %180 : vector<1x128xf32>
    %182 = arith.truncf %181 : vector<1x128xf32> to vector<1x128xbf16>
    %c0_39 = arith.constant 0 : index
    %c0_40 = arith.constant 0 : index
    %183 = vector.load %arg4[%c0_39, %c0_40] : memref<128x128xbf16, #tpu.memory_space<vmem>>, vector<128x128xbf16>
    %cst_41 = arith.constant dense<0.000000e+00> : vector<1x128xf32>
    %184 = tpu.matmul %182, %183, %cst_41 {dimension_numbers = #tpu.dot_dimension_numbers<[1], [0], [0], [1], [0, 0, 1, 1], [], []>} : vector<1x128xbf16>, vector<128x128xbf16>, vector<1x128xf32> -> vector<1x128xf32>
    %c0_42 = arith.constant 0 : index
    %c0_43 = arith.constant 0 : index
    %185 = vector.load %arg5[%c0_42, %c0_43] : memref<1x128xf32, #tpu.memory_space<vmem>>, vector<1x128xf32>
    %186 = arith.addf %184, %185 : vector<1x128xf32>
    %cst_44 = arith.constant dense<0xFF800000> : vector<1xf32>
    %187 = vector.multi_reduction <maximumf>, %186, %cst_44 [1] : vector<1x128xf32> to vector<1xf32>
    %188 = vector.shape_cast %187 : vector<1xf32> to vector<1x1xf32>
    %189 = vector.broadcast %188 : vector<1x1xf32> to vector<1x128xf32>
    %190 = arith.subf %186, %189 : vector<1x128xf32>
    %191 = math.exp %190 : vector<1x128xf32>
    %cst_45 = arith.constant dense<0.000000e+00> : vector<1xf32>
    %192 = vector.multi_reduction <add>, %191, %cst_45 [1] : vector<1x128xf32> to vector<1xf32>
    %193 = vector.shape_cast %192 : vector<1xf32> to vector<1x1xf32>
    %194 = math.log %193 : vector<1x1xf32>
    %195 = arith.addf %188, %194 : vector<1x1xf32>
    %196 = vector.broadcast %195 : vector<1x1xf32> to vector<1x128xf32>
    %197 = arith.subf %186, %196 : vector<1x128xf32>
    %c0_46 = arith.constant 0 : index
    %c0_47 = arith.constant 0 : index
    %198 = vector.load %arg6[%c0_46, %c0_47] : memref<1x128xf32, #tpu.memory_space<vmem>>, vector<1x128xf32>
    tpu.vector_store %arg6[%c0_46, %c0_47], %197 {strides = array<i32>} : memref<1x128xf32, #tpu.memory_space<vmem>>, vector<1x128xf32>,
    return
  }
}

</mosaic_0001>

<bundles_post_ra>
// kernel: tpu_custom_call.1
= control target key start
LH: loop header
LB: loop body
LE: loop exit
PB: predicated region body
PF: predicated region fallthrough
CT: control target
= control target key end

     0   :  { %11 = vsyncpa [#allocation3], 0  ;;  %s2640_s0 = inlined_call_operand.vmem [shape: s32[8,1], index: 0, kind: input, shape index: {}]   ;;  %s2641_s1 = inlined_call_operand.hbm [shape: bf16[64,512], index: 1, kind: input, shape index: {}]   ;;  %s2642_s2 = inlined_call_operand.hbm [shape: bf16[128,512], index: 2, kind: input, shape index: {}]   ;;  %s2643_s3 = inlined_call_operand.vmem [shape: f32[1,512], index: 3, kind: input, shape index: {}]   ;;  %s2644_s4 = inlined_call_operand.hbm [shape: bf16[128,128], index: 4, kind: input, shape index: {}]   ;;  %s2645_s5 = inlined_call_operand.vmem [shape: f32[1,128], index: 5, kind: input, shape index: {}]   ;;  %s2646_s6 = inlined_call_operand.hbm [shape: f32[1,128], index: 6, kind: output, shape index: {}]  }
   0x1   :  { %12 = vsyncpa [#allocation6], 0 }
   0x2   :  { %13 = vsyncpa [#allocation4], 0  ;;  %s2090_s21 = smov [#allocation5]   ;;  %s2091_s23 = smov [#allocation2]  }
   0x3   :  { %s33_s22 = sshll.u32 %s2090_s21, 4  ;;  %s21_s24 = sshll.u32 %s2091_s23, 4  ;;  %s34_s22 = int_to_ptr.vmem [resolvable:$true] %s33_s22  ;;  %s2136_s24 = int_to_ptr.vmem [resolvable:$true] %s21_s24 }
   0x4   :  { %s1996_s27 = scalar_lea.hbm %s2642_s2, 4096 }
   0x5   :  { %p1997_p0 = scmp.ne.s32.totalorder %s2642_s2, %s1996_s27  ;;  %p2000_p1 = scmp.lt.u32.totalorder %s1996_s27, %s2642_s2 }
   0x7   :  { %p2002_p2 = pnand %p2000_p1, %p1997_p0 }
   0x9   :  { %2005 = shalt.err (!%p2002_p2)
}
   0xa   :  { %s2006_s8 = scalar_lea.vmem %s34_s22, 4096  ;;  %p2011_p4 = scmp.lt.s32.totalorder %s34_s22, %s34_s22 }
   0xb   :  { %p2007_p3 = scmp.ne.s32.totalorder %s34_s22, %s2006_s8  ;;  %p2012_p5 = scmp.lt.s32.totalorder %s2006_s8, %s2006_s8 }
   0xd   :  { %p2013_p6 = por %p2012_p5, %p2011_p4 }
   0xf   :  { %p2014_p7 = pnand %p2013_p6, %p2007_p3 }
  0x11   :  { %2017 = shalt.err (!%p2014_p7)
}
  0x12   :  { %s2092_s9 = smov 256   ;;  %s2093_s10 = smov 16  }
  0x13   :  { %39 = dma.hbm_to_vmem [thread:$0]  %s2642_s2, 4096, %s34_s22, [#allocation6], %s2092_s9, %s2092_s9, %s2093_s10  }
  0x14   :  { %s2018_s15 = scalar_lea.hbm %s2641_s1, 2048 }
  0x15   :  { %p2019_p8 = scmp.ne.s32.totalorder %s2641_s1, %s2018_s15  ;;  %p2022_p9 = scmp.lt.u32.totalorder %s2018_s15, %s2641_s1 }
  0x17   :  { %p2024_p10 = pnand %p2022_p9, %p2019_p8 }
  0x19   :  { %2027 = shalt.err (!%p2024_p10)
}
  0x1a   :  { %s2028_s20 = scalar_lea.vmem %s2136_s24, 2048  ;;  %p2033_p12 = scmp.lt.s32.totalorder %s2136_s24, %s2136_s24 }
  0x1b   :  { %p2029_p11 = scmp.ne.s32.totalorder %s2136_s24, %s2028_s20  ;;  %p2034_p13 = scmp.lt.s32.totalorder %s2028_s20, %s2028_s20 }
  0x1d   :  { %p2035_p0 = por %p2034_p13, %p2033_p12 }
  0x1f   :  { %p2036_p1 = pnand %p2035_p0, %p2029_p11 }
  0x21   :  { %2039 = shalt.err (!%p2036_p1)
}
  0x22   :  { %27 = dma.hbm_to_vmem [thread:$0]  %s2641_s1, 2048, %s2136_s24, [#allocation3], %s2092_s9, %s2092_s9, %s2093_s10  }
  0x23   :  { %s2094_s22 = smov [#allocation7]   ;;  %s2040_s27 = scalar_lea.hbm %s2644_s4, 1024 }
  0x24   :  { %s47_s23 = sshll.u32 %s2094_s22, 4  ;;  %p2041_p2 = scmp.ne.s32.totalorder %s2644_s4, %s2040_s27  ;;  %s48_s23 = int_to_ptr.vmem [resolvable:$true] %s47_s23 }
  0x25   :  { %p2044_p3 = scmp.lt.u32.totalorder %s2040_s27, %s2644_s4 }
  0x27   :  { %p2046_p4 = pnand %p2044_p3, %p2041_p2 }
  0x29   :  { %2049 = shalt.err (!%p2046_p4)
}
  0x2a   :  { %s2050_s8 = scalar_lea.vmem %s48_s23, 1024  ;;  %p2055_p6 = scmp.lt.s32.totalorder %s48_s23, %s48_s23 }
  0x2b   :  { %p2051_p5 = scmp.ne.s32.totalorder %s48_s23, %s2050_s8  ;;  %p2056_p7 = scmp.lt.s32.totalorder %s2050_s8, %s2050_s8 }
  0x2d   :  { %p2057_p8 = por %p2056_p7, %p2055_p6 }
  0x2f   :  { %p2058_p9 = pnand %p2057_p8, %p2051_p5 }
  0x31   :  { %2061 = shalt.err (!%p2058_p9)
}
  0x32   :  { %s2095_s1 = smov 64   ;;  %s2096_s24 = smov 4  }
  0x33   :  { %53 = dma.hbm_to_vmem [thread:$0]  %s2644_s4, 1024, %s48_s23, [#allocation6], %s2095_s1, %s2095_s1, %s2096_s24  }
  0x34   :  { %2084 = dma.done.wait [#allocation3], 2048  }
  0x35   :  { %2085 = vsyncadd [#allocation3], 4294965248 }
  0x36   :  { %2086 = dma.done.wait [#allocation6], 5120  }
  0x37   :  { %2087 = vsyncadd [#allocation6], 4294962176  ;;  %v2097_v0 = vmov 0   ;;  %v68_v1 = vld [vmem:[%s2640_s0] sm:$0xff]  ;;  %v1790_v21 = vld [vmem:[#allocation2 + $0xc] ss:$16 sps:$4 sm:$0xff]   ;;  %v66_v27 = vlaneseq }
  0x38   :  { %1752 = vset.pattern.permute.xlu0 %v2097_v0  ;;  %230 = vmatprep.mubr.bf16.mxu1 %v2097_v0  ;;  %v2185_v2 = vld [vmem:[#allocation5 + $0x4] ss:$16 sps:$4 sm:$0xff]   ;;  %v2187_v3 = vld [vmem:[#allocation5] ss:$16 sps:$4 sm:$0xff]   ;;  %v2098_v30 = vmov 0.0   ;;  %vm194_vm1 = vcmask 523264  }
  0x39   :  { %504 = vmatprep.mubr.bf16.mxu0 %v2097_v0  ;;  %70 = vperm.xlu0 %1752, %v68_v1   ;;  %v2189_v4 = vld [vmem:[#allocation5 + $0x24] ss:$16 sps:$4 sm:$0xff]   ;;  %v2193_v5 = vld [vmem:[#allocation5 + $0x20] ss:$16 sps:$4 sm:$0xff]   ;;  %v67_v28 = vand.u32 127, %v66_v27  ;;  %v95_v60 = vshrl.u32 %v66_v27, 7 }
  0x3a   :  { %472 = vmatprep.subr.bf16.mxu0 %v2185_v2  ;;  %v2196_v6 = vld [vmem:[#allocation5 + $0x44] ss:$16 sps:$4 sm:$0xff]   ;;  %v1767_v8 = vld [vmem:[#allocation2] ss:$16 sps:$4 sm:$0xff]   ;;  %v1788_v32 = vld [vmem:[#allocation2 + $0x8] ss:$16 sps:$4 sm:$0xff]  }
  0x3b   :  { %473 = vmatpush1.bf16.msra.mxu0 %v2187_v3  ;;  %v1764_v7 = vld [vmem:[#allocation2 + $0x4] ss:$16 sps:$4 sm:$0xff]   ;;  %v2198_v9 = vld [vmem:[#allocation5 + $0x40] ss:$16 sps:$4 sm:$0xff]   ;;  %v1794_v34 = vld [vmem:[#allocation2 + $0x2c] ss:$16 sps:$4 sm:$0xff]  }
  0x3c   :  { %474 = vmatprep.subr.bf16.mxu0 %v2189_v4  ;;  %198 = vmatprep.subr.bf16.mxu1 %v1764_v7  ;;  %v1770_v10 = vld [vmem:[#allocation2 + $0x24] ss:$16 sps:$4 sm:$0xff]   ;;  %v1773_v12 = vld [vmem:[#allocation2 + $0x20] ss:$16 sps:$4 sm:$0xff]   ;;  %v1792_v35 = vld [vmem:[#allocation2 + $0x28] ss:$16 sps:$4 sm:$0xff]  }
  0x3d   :  { %v2202_v11 = vld [vmem:[#allocation5 + $0x64] ss:$16 sps:$4 sm:$0xff]   ;;  %199 = vmatpush1.bf16.msra.mxu1 %v1767_v8  ;;  %v2204_v13 = vld [vmem:[#allocation5 + $0x60] ss:$16 sps:$4 sm:$0xff]   ;;  %v1797_v36 = vld [vmem:[#allocation2 + $0x4c] ss:$16 sps:$4 sm:$0xff]  }
  0x3e   :  { %200 = vmatprep.subr.bf16.mxu1 %v1770_v10  ;;  %v1776_v14 = vld [vmem:[#allocation2 + $0x44] ss:$16 sps:$4 sm:$0xff]   ;;  %v1779_v16 = vld [vmem:[#allocation2 + $0x40] ss:$16 sps:$4 sm:$0xff]   ;;  %v1795_v37 = vld [vmem:[#allocation2 + $0x48] ss:$16 sps:$4 sm:$0xff]  }
  0x3f   :  { %475 = vmatpush1.bf16.msra.mxu0 %v2193_v5  ;;  %v2207_v15 = vld [vmem:[#allocation5 + $0x84] ss:$16 sps:$4 sm:$0xff]   ;;  %v2211_v18 = vld [vmem:[#allocation5 + $0x80] ss:$16 sps:$4 sm:$0xff]   ;;  %v1800_v38 = vld [vmem:[#allocation2 + $0x6c] ss:$16 sps:$4 sm:$0xff]  }
  0x40   :  { %476 = vmatprep.subr.bf16.mxu0 %v2196_v6  ;;  %v1782_v17 = vld [vmem:[#allocation2 + $0x64] ss:$16 sps:$4 sm:$0xff]   ;;  %v1785_v20 = vld [vmem:[#allocation2 + $0x60] ss:$16 sps:$4 sm:$0xff]   ;;  %v1798_v39 = vld [vmem:[#allocation2 + $0x68] ss:$16 sps:$4 sm:$0xff]  }
  0x41   :  { %201 = vmatpush1.bf16.msra.mxu1 %v1773_v12  ;;  %v2214_v19 = vld [vmem:[#allocation5 + $0xa4] ss:$16 sps:$4 sm:$0xff]   ;;  %v2217_v22 = vld [vmem:[#allocation5 + $0xa0] ss:$16 sps:$4 sm:$0xff]   ;;  %v2256_v40 = vld [vmem:[#allocation5 + $0xc] ss:$16 sps:$4 sm:$0xff]  }
  0x42   :  { %202 = vmatprep.subr.bf16.mxu1 %v1776_v14  ;;  %v2220_v23 = vld [vmem:[#allocation5 + $0xc4] ss:$16 sps:$4 sm:$0xff]   ;;  %v2222_v24 = vld [vmem:[#allocation5 + $0xc0] ss:$16 sps:$4 sm:$0xff]   ;;  %v2258_v41 = vld [vmem:[#allocation5 + $0x8] ss:$16 sps:$4 sm:$0xff]  }
  0x43   :  { %477 = vmatpush1.bf16.msra.mxu0 %v2198_v9  ;;  %v2225_v25 = vld [vmem:[#allocation5 + $0xe4] ss:$16 sps:$4 sm:$0xff]   ;;  %v2228_v26 = vld [vmem:[#allocation5 + $0xe0] ss:$16 sps:$4 sm:$0xff]   ;;  %v2261_v42 = vld [vmem:[#allocation5 + $0x2c] ss:$16 sps:$4 sm:$0xff]  }
  0x44   :  { %478 = vmatprep.subr.bf16.mxu0 %v2202_v11  ;;  %v2265_v43 = vld [vmem:[#allocation5 + $0x28] ss:$16 sps:$4 sm:$0xff]   ;;  %v2269_v44 = vld [vmem:[#allocation5 + $0x4c] ss:$16 sps:$4 sm:$0xff]   ;;  %v96_v61 = vsub.s32 0, %v95_v60  ;;  %v100_v63 = vsub.s32 1, %v95_v60 }
  0x45   :  { %203 = vmatpush1.bf16.msra.mxu1 %v1779_v16  ;;  %v2272_v45 = vld [vmem:[#allocation5 + $0x48] ss:$16 sps:$4 sm:$0xff]   ;;  %v2275_v46 = vld [vmem:[#allocation5 + $0x6c] ss:$16 sps:$4 sm:$0xff]   ;;  %v92_v62 = vld [vmem:[%s2643_s3] sm:$0xf] }
  0x46   :  { %204 = vmatprep.subr.bf16.mxu1 %v1782_v17  ;;  %v2278_v47 = vld [vmem:[#allocation5 + $0x68] ss:$16 sps:$4 sm:$0xff]   ;;  %v2281_v48 = vld [vmem:[#allocation5 + $0x8c] ss:$16 sps:$4 sm:$0xff]   ;;  %v97_v1 = vrot.slane %v92_v62, %v96_v61  ;;  %v101_v7 = vrot.slane %v92_v62, %v100_v63  ;;  %vm2099_vm2 = vmmov 0   ;;  %vm1598_vm3 = vcmask 1040384  }
  0x47   :  { %479 = vmatpush1.bf16.msra.mxu0 %v2204_v13  ;;  %v2284_v49 = vld [vmem:[#allocation5 + $0x88] ss:$16 sps:$4 sm:$0xff]   ;;  %v2287_v50 = vld [vmem:[#allocation5 + $0xac] ss:$16 sps:$4 sm:$0xff]  }
  0x48   :  { %480 = vmatprep.subr.bf16.mxu0 %v2207_v15  ;;  %v2290_v51 = vld [vmem:[#allocation5 + $0xa8] ss:$16 sps:$4 sm:$0xff]   ;;  %v2293_v52 = vld [vmem:[#allocation5 + $0xcc] ss:$16 sps:$4 sm:$0xff]  }
  0x49   :  { %205 = vmatpush1.bf16.msra.mxu1 %v1785_v20  ;;  %v2296_v53 = vld [vmem:[#allocation5 + $0xc8] ss:$16 sps:$4 sm:$0xff]   ;;  %v2299_v54 = vld [vmem:[#allocation5 + $0xec] ss:$16 sps:$4 sm:$0xff]   ;;  %v104_v20 = vsub.s32 2, %v95_v60 }
  0x4a   :  { %239 = vmatprep.subr.bf16.mxu1 %v1790_v21  ;;  %v2302_v55 = vld [vmem:[#allocation5 + $0xe8] ss:$16 sps:$4 sm:$0xff]   ;;  %v108_v21 = vsub.s32 3, %v95_v60 }
  0x4b   :  { %481 = vmatpush1.bf16.msra.mxu0 %v2211_v18 }
  0x4c   :  { %482 = vmatprep.subr.bf16.mxu0 %v2214_v19  ;;  %v109_v27 = vrot.slane %v92_v62, %v108_v21 }
  0x4f   :  { %483 = vmatpush1.bf16.msra.mxu0 %v2217_v22 }
  0x50   :  { %484 = vmatprep.subr.bf16.mxu0 %v2220_v23 }
  0x53   :  { %485 = vmatpush1.bf16.msra.mxu0 %v2222_v24 }
  0x54   :  { %486 = vmatprep.subr.bf16.mxu0 %v2225_v25 }
  0x57   :  { %487 = vmatpush1.bf16.msra.mxu0 %v2228_v26 }
  0x58   :  { %583 = vmatprep.subr.bf16.mxu0 %v2185_v2 }
  0x5a   :  { %505 = vmatmul.mubr.bf16.vlgmr.msra.gmra.mrb[0].mxu0 %v2097_v0 }
  0x5b   :  { %584 = vmatpush1.bf16.msra.mxu0 %v2187_v3  ;;  %615 = vmatprep.mubr.bf16.mxu0 %v2097_v0 }
  0x5c   :  { %585 = vmatprep.subr.bf16.mxu0 %v2189_v4 }
  0x5f   :  { %586 = vmatpush1.bf16.msra.mxu0 %v2193_v5 }
  0x60   :  { %587 = vmatprep.subr.bf16.mxu0 %v2196_v6 }
  0x63   :  { %588 = vmatpush1.bf16.msra.mxu0 %v2198_v9 }
  0x64   :  { %589 = vmatprep.subr.bf16.mxu0 %v2202_v11 }
  0x67   :  { %590 = vmatpush1.bf16.msra.mxu0 %v2204_v13 }
  0x68   :  { %591 = vmatprep.subr.bf16.mxu0 %v2207_v15 }
  0x6b   :  { %592 = vmatpush1.bf16.msra.mxu0 %v2211_v18 }
  0x6c   :  { %593 = vmatprep.subr.bf16.mxu0 %v2214_v19 }
  0x6f   :  { %594 = vmatpush1.bf16.msra.mxu0 %v2217_v22 }
  0x70   :  { %595 = vmatprep.subr.bf16.mxu0 %v2220_v23 }
  0x73   :  { %596 = vmatpush1.bf16.msra.mxu0 %v2222_v24 }
  0x74   :  { %597 = vmatprep.subr.bf16.mxu0 %v2225_v25 }
  0x77   :  { %598 = vmatpush1.bf16.msra.mxu0 %v2228_v26 }
  0x78   :  { %713 = vmatprep.subr.bf16.mxu0 %v2185_v2 }
  0xb8   :  { %v71_v29 = vpop.permute.xlu0 %70 }
  0xb9   :  { %vm72_vm0 = vcmp.eq.s32.totalorder %v67_v28, %v71_v29  ;;  %v105_v28 = vrot.slane %v92_v62, %v104_v20 }
  0xba   :  { %v1629_v31 = vsel %vm72_vm0, 1.0, %v2098_v30 }
  0xbb   :  { %v75_v33 = vpack.c.bf16 %v1629_v31, %v1629_v31 }
  0xbd   :  { %1646 = vmatmul.mubr.msk.bf16.vlgmr.msra.gmra.mrb[0].mxu1 %vm194_vm1, %v75_v33 }
  0xbe   :  { %240 = vmatpush1.bf16.msra.mxu1 %v1788_v32  ;;  %271 = vmatprep.mubr.bf16.mxu1 %v2097_v0 }
  0xbf   :  { %241 = vmatprep.subr.bf16.mxu1 %v1794_v34 }
  0xc2   :  { %242 = vmatpush1.bf16.msra.mxu1 %v1792_v35 }
  0xc3   :  { %243 = vmatprep.subr.bf16.mxu1 %v1797_v36 }
  0xc6   :  { %244 = vmatpush1.bf16.msra.mxu1 %v1795_v37 }
  0xc7   :  { %245 = vmatprep.subr.bf16.mxu1 %v1800_v38 }
  0xca   :  { %246 = vmatpush1.bf16.msra.mxu1 %v1798_v39 }
  0xcb   :  { %513 = vmatprep.subr.bf16.mxu1 %v2256_v40 }
  0xcd   :  { %1647 = vmatmul.mubr.msk.bf16.vlgmr.msra.gmra.mrb[4].mxu1 %vm194_vm1, %v75_v33 }
  0xce   :  { %514 = vmatpush1.bf16.msra.mxu1 %v2258_v41  ;;  %545 = vmatprep.mubr.bf16.mxu1 %v2097_v0 }
  0xcf   :  { %515 = vmatprep.subr.bf16.mxu1 %v2261_v42 }
  0xd2   :  { %516 = vmatpush1.bf16.msra.mxu1 %v2265_v43 }
  0xd3   :  { %517 = vmatprep.subr.bf16.mxu1 %v2269_v44 }
  0xd6   :  { %518 = vmatpush1.bf16.msra.mxu1 %v2272_v45 }
  0xd7   :  { %519 = vmatprep.subr.bf16.mxu1 %v2275_v46 }
  0xda   :  { %520 = vmatpush1.bf16.msra.mxu1 %v2278_v47 }
  0xdb   :  { %521 = vmatprep.subr.bf16.mxu1 %v2281_v48 }
  0xde   :  { %522 = vmatpush1.bf16.msra.mxu1 %v2284_v49 }
  0xdf   :  { %523 = vmatprep.subr.bf16.mxu1 %v2287_v50 }
  0xe2   :  { %524 = vmatpush1.bf16.msra.mxu1 %v2290_v51 }
  0xe3   :  { %525 = vmatprep.subr.bf16.mxu1 %v2293_v52 }
  0xe6   :  { %526 = vmatpush1.bf16.msra.mxu1 %v2296_v53 }
  0xe7   :  { %527 = vmatprep.subr.bf16.mxu1 %v2299_v54 }
  0xea   :  { %528 = vmatpush1.bf16.msra.mxu1 %v2302_v55 }
  0xeb   :  { %624 = vmatprep.subr.bf16.mxu1 %v2256_v40 }
  0xed   :  { %546 = vmatmul.mubr.bf16.vlgmr.msra.gmra.mrb[8].mxu1 %v2097_v0 }
  0xee   :  { %625 = vmatpush1.bf16.msra.mxu1 %v2258_v41  ;;  %656 = vmatprep.mubr.bf16.mxu1 %v2097_v0 }
  0xef   :  { %626 = vmatprep.subr.bf16.mxu1 %v2261_v42 }
  0xf2   :  { %627 = vmatpush1.bf16.msra.mxu1 %v2265_v43 }
  0xf3   :  { %628 = vmatprep.subr.bf16.mxu1 %v2269_v44 }
  0xf6   :  { %629 = vmatpush1.bf16.msra.mxu1 %v2272_v45 }
  0xf7   :  { %630 = vmatprep.subr.bf16.mxu1 %v2275_v46 }
  0xfa   :  { %631 = vmatpush1.bf16.msra.mxu1 %v2278_v47 }
  0xfb   :  { %632 = vmatprep.subr.bf16.mxu1 %v2281_v48 }
  0xfe   :  { %633 = vmatpush1.bf16.msra.mxu1 %v2284_v49 }
  0xff   :  { %634 = vmatprep.subr.bf16.mxu1 %v2287_v50 }
 0x102   :  { %635 = vmatpush1.bf16.msra.mxu1 %v2290_v51 }
 0x103   :  { %636 = vmatprep.subr.bf16.mxu1 %v2293_v52 }
 0x106   :  { %637 = vmatpush1.bf16.msra.mxu1 %v2296_v53 }
 0x107   :  { %638 = vmatprep.subr.bf16.mxu1 %v2299_v54 }
 0x10a   :  { %639 = vmatpush1.bf16.msra.mxu1 %v2302_v55 }
 0x10b   :  { %754 = vmatprep.subr.bf16.mxu1 %v2256_v40 }
 0x12d   :  { %v506_v56 = vpop.f32.mrb[0].mxu0 }
 0x12e   :  { %v508_v57 = vpop.f32.mrb[1].mxu0 }
 0x12f   :  { %v510_v58 = vpop.f32.mrb[2].mxu0 }
 0x130   :  { %v511_v59 = vpop.f32.mrb[3].mxu0 }
 0x190   :  { %v232_v8 = vpop.f32.mrb[0].mxu1 }
 0x191   :  { %v2329_v10 = vadd.f32 %v232_v8, %v97_v1  ;;  %v234_v12 = vpop.f32.mrb[1].mxu1 }
 0x192   :  { %v2331_v14 = vadd.f32 %v234_v12, %v101_v7  ;;  %v236_v16 = vpop.f32.mrb[2].mxu1 }
 0x193   :  { %v237_v17 = vpop.f32.mrb[3].mxu1  ;;  %v554_v37 = vadd.f32 %v506_v56, %v2329_v10 }
 0x194   :  { %v555_v36 = vadd.f32 %v508_v57, %v2331_v14 }
 0x195   :  { %v1680_v39 = vmul.f32 -1.442695, %v554_v37 }
 0x196   :  { %v1681_v38 = vmul.f32 -1.442695, %v555_v36 }
 0x198   :  { %1833 = vpow2.f32 %v1681_v38 }
 0x199   :  { %1835 = vpow2.f32 %v1680_v39 }
 0x1a0   :  { %v273_v29 = vpop.f32.mrb[4].mxu1 }
 0x1a1   :  { %v2333_v31 = vadd.f32 %v273_v29, %v105_v28  ;;  %v275_v32 = vpop.f32.mrb[5].mxu1 }
 0x1a2   :  { %v2335_v33 = vadd.f32 %v275_v32, %v109_v27  ;;  %v277_v34 = vpop.f32.mrb[6].mxu1  ;;  %v1834_v58 = vpop.eup %1833 }
 0x1a3   :  { %v278_v35 = vpop.f32.mrb[7].mxu1  ;;  %v1836_v59 = vpop.eup %1835  ;;  %v568_v60 = vadd.f32 1.0, %v1834_v58 }
 0x1a4   :  { %v567_v61 = vadd.f32 1.0, %v1836_v59 }
 0x1a5   :  { %1837 = vrcp.f32 %v568_v60 }
 0x1a6   :  { %1839 = vrcp.f32 %v567_v61 }
 0x1af   :  { %v1838_v56 = vpop.eup %1837 }
 0x1b0   :  { %v1840_v16 = vpop.eup %1839  ;;  %v577_v21 = vmul.f32 0.0, %v1838_v56 }
 0x1c0   :  { %v547_v62 = vpop.f32.mrb[8].mxu1 }
 0x1c1   :  { %v556_v63 = vadd.f32 %v547_v62, %v2333_v31  ;;  %v549_v1 = vpop.f32.mrb[9].mxu1 }
 0x1c2   :  { %v557_v7 = vadd.f32 %v549_v1, %v2335_v33  ;;  %v551_v8 = vpop.f32.mrb[10].mxu1 }
 0x1c3   :  { %v1682_v57 = vmul.f32 -1.442695, %v556_v63  ;;  %v552_v12 = vpop.f32.mrb[11].mxu1 }
 0x1c4   :  { %1841 = vtanh.f32 %v557_v7 }
 0x1c5   :  { %1843 = vpow2.f32 %v1682_v57 }
 0x1ce   :  { %v1842_v17 = vpop.eup %1841 }
 0x1cf   :  { %v1844_v20 = vpop.eup %1843  ;;  %v578_v28 = vmul.f32 %v1842_v17, %v1840_v16 }
 0x1d0   :  { %v569_v27 = vadd.f32 1.0, %v1844_v20 }
 0x1d1   :  { %v2341_v29 = vadd.f32 %v578_v28, %v577_v21 }
 0x1d2   :  { %1845 = vrcp.f32 %v569_v27 }
 0x1d3   :  { %1847 = vtanh.f32 %v2341_v29 }
 0x1dc   :  { %v1846_v32 = vpop.eup %1845 }
 0x1dd   :  { %v1848_v34 = vpop.eup %1847 }
 0x1de   :  { %v581_v35 = vmul.f32 %v1848_v34, %v1846_v32 }
 0x1e0   :  { %v582_v36 = vpack.c.bf16 %v581_v35, %v581_v35 }
 0x1e2   :  { %616 = vmatmul.mubr.bf16.vlgmr.msra.gmra.mrb[4].mxu0 %v582_v36  ;;  %657 = vmatmul.mubr.bf16.vlgmr.msra.gmra.mrb[12].mxu1 %v582_v36 }
 0x1e3   :  { %714 = vmatpush1.bf16.msra.mxu0 %v2187_v3  ;;  %755 = vmatpush1.bf16.msra.mxu1 %v2258_v41 }
 0x1e4   :  { %715 = vmatprep.subr.bf16.mxu0 %v2189_v4  ;;  %756 = vmatprep.subr.bf16.mxu1 %v2261_v42 }
 0x1e5   :  { %745 = vmatprep.mubr.bf16.mxu0 %v2097_v0  ;;  %786 = vmatprep.mubr.bf16.mxu1 %v2097_v0 }
 0x1e7   :  { %716 = vmatpush1.bf16.msra.mxu0 %v2193_v5  ;;  %757 = vmatpush1.bf16.msra.mxu1 %v2265_v43 }
 0x1e8   :  { %717 = vmatprep.subr.bf16.mxu0 %v2196_v6  ;;  %758 = vmatprep.subr.bf16.mxu1 %v2269_v44 }
 0x1eb   :  { %718 = vmatpush1.bf16.msra.mxu0 %v2198_v9  ;;  %759 = vmatpush1.bf16.msra.mxu1 %v2272_v45 }
 0x1ec   :  { %719 = vmatprep.subr.bf16.mxu0 %v2202_v11  ;;  %760 = vmatprep.subr.bf16.mxu1 %v2275_v46 }
 0x1ef   :  { %720 = vmatpush1.bf16.msra.mxu0 %v2204_v13  ;;  %761 = vmatpush1.bf16.msra.mxu1 %v2278_v47 }
 0x1f0   :  { %721 = vmatprep.subr.bf16.mxu0 %v2207_v15  ;;  %762 = vmatprep.subr.bf16.mxu1 %v2281_v48 }
 0x1f3   :  { %722 = vmatpush1.bf16.msra.mxu0 %v2211_v18  ;;  %763 = vmatpush1.bf16.msra.mxu1 %v2284_v49 }
 0x1f4   :  { %723 = vmatprep.subr.bf16.mxu0 %v2214_v19  ;;  %764 = vmatprep.subr.bf16.mxu1 %v2287_v50 }
 0x1f7   :  { %724 = vmatpush1.bf16.msra.mxu0 %v2217_v22  ;;  %765 = vmatpush1.bf16.msra.mxu1 %v2290_v51 }
 0x1f8   :  { %725 = vmatprep.subr.bf16.mxu0 %v2220_v23  ;;  %766 = vmatprep.subr.bf16.mxu1 %v2293_v52 }
 0x1fb   :  { %726 = vmatpush1.bf16.msra.mxu0 %v2222_v24  ;;  %767 = vmatpush1.bf16.msra.mxu1 %v2296_v53 }
 0x1fc   :  { %727 = vmatprep.subr.bf16.mxu0 %v2225_v25  ;;  %768 = vmatprep.subr.bf16.mxu1 %v2299_v54 }
 0x1ff   :  { %728 = vmatpush1.bf16.msra.mxu0 %v2228_v26  ;;  %769 = vmatpush1.bf16.msra.mxu1 %v2302_v55 }
 0x200   :  { %842 = vmatprep.subr.bf16.mxu0 %v2185_v2  ;;  %883 = vmatprep.subr.bf16.mxu1 %v2256_v40 }
 0x2b5   :  { %v617_v37 = vpop.f32.mrb[4].mxu0  ;;  %v658_v38 = vpop.f32.mrb[12].mxu1 }
 0x2b6   :  { %v669_v39 = vrot.slane %v617_v37, 7  ;;  %v619_v58 = vpop.f32.mrb[5].mxu0  ;;  %v660_v59 = vpop.f32.mrb[13].mxu1  ;;  %v671_v56 = vrot.slane %v658_v38, 7  ;;  %v701_v38 = vrot.slane %v2341_v29, 7 }
 0x2b7   :  { %v670_v60 = vrot.slane %v619_v58, 7  ;;  %v621_v61 = vpop.f32.mrb[6].mxu0  ;;  %v662_v62 = vpop.f32.mrb[14].mxu1  ;;  %v672_v16 = vrot.slane %v660_v59, 7 }
 0x2b8   :  { %v677_v63 = vadd.f32 %v669_v39, %v2329_v10  ;;  %v622_v1 = vpop.f32.mrb[7].mxu0  ;;  %v663_v7 = vpop.f32.mrb[15].mxu1  ;;  %v679_v17 = vadd.f32 %v671_v56, %v2333_v31 }
 0x2b9   :  { %v678_v8 = vadd.f32 %v670_v60, %v2331_v14  ;;  %v680_v20 = vadd.f32 %v672_v16, %v2335_v33 }
 0x2ba   :  { %v1683_v57 = vmul.f32 -1.442695, %v677_v63  ;;  %v1685_v21 = vmul.f32 -1.442695, %v679_v17 }
 0x2bb   :  { %v1684_v12 = vmul.f32 -1.442695, %v678_v8 }
 0x2bc   :  { %1849 = vpow2.f32 %v1683_v57 }
 0x2bd   :  { %1851 = vpow2.f32 %v1684_v12 }
 0x2be   :  { %1853 = vtanh.f32 %v680_v20 }
 0x2bf   :  { %1855 = vpow2.f32 %v1685_v21 }
 0x2c6   :  { %v1850_v28 = vpop.eup %1849 }
 0x2c7   :  { %v690_v27 = vadd.f32 1.0, %v1850_v28  ;;  %v1852_v32 = vpop.eup %1851 }
 0x2c8   :  { %v691_v34 = vadd.f32 1.0, %v1852_v32  ;;  %v1854_v35 = vpop.eup %1853 }
 0x2c9   :  { %1857 = vrcp.f32 %v690_v27  ;;  %v1856_v36 = vpop.eup %1855 }
 0x2ca   :  { %1859 = vrcp.f32 %v691_v34  ;;  %v692_v59 = vadd.f32 1.0, %v1856_v36 }
 0x2cc   :  { %1861 = vrcp.f32 %v692_v59 }
 0x2d3   :  { %v1858_v37 = vpop.eup %1857 }
 0x2d4   :  { %v704_v39 = vmul.f32 %v1858_v37, %v1854_v35  ;;  %v1860_v58 = vpop.eup %1859 }
 0x2d5   :  { %v703_v60 = vmul.f32 %v1860_v58, %v701_v38 }
 0x2d6   :  { %v1862_v62 = vpop.eup %1861 }
 0x2d7   :  { %v2383_v61 = vadd.f32 %v704_v39, %v703_v60 }
 0x2d9   :  { %1863 = vtanh.f32 %v2383_v61 }
 0x2e3   :  { %v1864_v63 = vpop.eup %1863 }
 0x2e4   :  { %v707_v1 = vmul.f32 %v1864_v63, %v1862_v62 }
 0x2e6   :  { %v708_v7 = vpack.c.bf16 %v707_v1, %v707_v1 }
 0x2e8   :  { %v710_v8 = vshrl.u32 %v708_v7, 16 }
 0x2ea   :  { %746 = vmatmul.mubr.bf16.vlgmr.msra.gmra.mrb[8].mxu0 %v710_v8  ;;  %787 = vmatmul.mubr.bf16.vlgmr.msra.gmra.mrb[16].mxu1 %v710_v8 }
 0x2eb   :  { %843 = vmatpush1.bf16.msra.mxu0 %v2187_v3  ;;  %884 = vmatpush1.bf16.msra.mxu1 %v2258_v41 }
 0x2ec   :  { %844 = vmatprep.subr.bf16.mxu0 %v2189_v4  ;;  %885 = vmatprep.subr.bf16.mxu1 %v2261_v42 }
 0x2ed   :  { %874 = vmatprep.mubr.bf16.mxu0 %v2097_v0  ;;  %915 = vmatprep.mubr.bf16.mxu1 %v2097_v0 }
 0x2ef   :  { %845 = vmatpush1.bf16.msra.mxu0 %v2193_v5  ;;  %886 = vmatpush1.bf16.msra.mxu1 %v2265_v43 }
 0x2f0   :  { %846 = vmatprep.subr.bf16.mxu0 %v2196_v6  ;;  %887 = vmatprep.subr.bf16.mxu1 %v2269_v44 }
 0x2f3   :  { %847 = vmatpush1.bf16.msra.mxu0 %v2198_v9  ;;  %888 = vmatpush1.bf16.msra.mxu1 %v2272_v45 }
 0x2f4   :  { %848 = vmatprep.subr.bf16.mxu0 %v2202_v11  ;;  %889 = vmatprep.subr.bf16.mxu1 %v2275_v46 }
 0x2f7   :  { %849 = vmatpush1.bf16.msra.mxu0 %v2204_v13  ;;  %890 = vmatpush1.bf16.msra.mxu1 %v2278_v47 }
 0x2f8   :  { %850 = vmatprep.subr.bf16.mxu0 %v2207_v15  ;;  %891 = vmatprep.subr.bf16.mxu1 %v2281_v48 }
 0x2fb   :  { %851 = vmatpush1.bf16.msra.mxu0 %v2211_v18  ;;  %892 = vmatpush1.bf16.msra.mxu1 %v2284_v49 }
 0x2fc   :  { %852 = vmatprep.subr.bf16.mxu0 %v2214_v19  ;;  %893 = vmatprep.subr.bf16.mxu1 %v2287_v50 }
 0x2ff   :  { %853 = vmatpush1.bf16.msra.mxu0 %v2217_v22  ;;  %894 = vmatpush1.bf16.msra.mxu1 %v2290_v51 }
 0x300   :  { %854 = vmatprep.subr.bf16.mxu0 %v2220_v23  ;;  %895 = vmatprep.subr.bf16.mxu1 %v2293_v52 }
 0x303   :  { %855 = vmatpush1.bf16.msra.mxu0 %v2222_v24  ;;  %896 = vmatpush1.bf16.msra.mxu1 %v2296_v53 }
 0x304   :  { %856 = vmatprep.subr.bf16.mxu0 %v2225_v25  ;;  %897 = vmatprep.subr.bf16.mxu1 %v2299_v54 }
 0x307   :  { %857 = vmatpush1.bf16.msra.mxu0 %v2228_v26  ;;  %898 = vmatpush1.bf16.msra.mxu1 %v2302_v55 }
 0x308   :  { %973 = vmatprep.subr.bf16.mxu0 %v2185_v2  ;;  %1014 = vmatprep.subr.bf16.mxu1 %v2256_v40 }
 0x3bd   :  { %v747_v29 = vpop.f32.mrb[8].mxu0  ;;  %v788_v57 = vpop.f32.mrb[16].mxu1 }
 0x3be   :  { %v799_v12 = vrot.slane %v747_v29, 6  ;;  %v749_v56 = vpop.f32.mrb[9].mxu0  ;;  %v790_v16 = vpop.f32.mrb[17].mxu1  ;;  %v801_v37 = vrot.slane %v788_v57, 6  ;;  %v831_v57 = vrot.slane %v2383_v61, 7 }
 0x3bf   :  { %v800_v17 = vrot.slane %v749_v56, 6  ;;  %v751_v20 = vpop.f32.mrb[10].mxu0  ;;  %v792_v21 = vpop.f32.mrb[18].mxu1  ;;  %v802_v38 = vrot.slane %v790_v16, 6 }
 0x3c0   :  { %v807_v28 = vadd.f32 %v799_v12, %v2329_v10  ;;  %v752_v27 = vpop.f32.mrb[11].mxu0  ;;  %v793_v32 = vpop.f32.mrb[19].mxu1  ;;  %v809_v39 = vadd.f32 %v801_v37, %v2333_v31 }
 0x3c1   :  { %v808_v34 = vadd.f32 %v800_v17, %v2331_v14  ;;  %v810_v58 = vadd.f32 %v802_v38, %v2335_v33 }
 0x3c2   :  { %v1686_v35 = vmul.f32 -1.442695, %v807_v28  ;;  %v1688_v59 = vmul.f32 -1.442695, %v809_v39 }
 0x3c3   :  { %v1687_v36 = vmul.f32 -1.442695, %v808_v34 }
 0x3c4   :  { %1865 = vpow2.f32 %v1686_v35 }
 0x3c5   :  { %1867 = vpow2.f32 %v1687_v36 }
 0x3c6   :  { %1869 = vtanh.f32 %v810_v58 }
 0x3c7   :  { %1871 = vpow2.f32 %v1688_v59 }
 0x3ce   :  { %v1866_v60 = vpop.eup %1865 }
 0x3cf   :  { %v820_v62 = vadd.f32 1.0, %v1866_v60  ;;  %v1868_v63 = vpop.eup %1867 }
 0x3d0   :  { %v821_v1 = vadd.f32 1.0, %v1868_v63  ;;  %v1870_v7 = vpop.eup %1869 }
 0x3d1   :  { %1873 = vrcp.f32 %v820_v62  ;;  %v1872_v8 = vpop.eup %1871 }
 0x3d2   :  { %1875 = vrcp.f32 %v821_v1  ;;  %v822_v16 = vadd.f32 1.0, %v1872_v8 }
 0x3d4   :  { %1877 = vrcp.f32 %v822_v16 }
 0x3db   :  { %v1874_v29 = vpop.eup %1873 }
 0x3dc   :  { %v834_v12 = vmul.f32 %v1874_v29, %v1870_v7  ;;  %v1876_v56 = vpop.eup %1875 }
 0x3dd   :  { %v833_v17 = vmul.f32 %v1876_v56, %v831_v57 }
 0x3de   :  { %v1878_v21 = vpop.eup %1877 }
 0x3df   :  { %v2425_v20 = vadd.f32 %v834_v12, %v833_v17 }
 0x3e1   :  { %1879 = vtanh.f32 %v2425_v20 }
 0x3eb   :  { %v1880_v28 = vpop.eup %1879 }
 0x3ec   :  { %v837_v27 = vmul.f32 %v1880_v28, %v1878_v21 }
 0x3ee   :  { %v838_v32 = vpack.c.bf16 %v837_v27, %v837_v27  ;;  %v960_v27 = vrot.slane %v2425_v20, 7  ;;  %v2474_v20 = vld [vmem:[#allocation5 + $0x24] ss:$16 sps:$4 sm:$0xff]  }
 0x3f0   :  { %v840_v34 = vrot.slane %v838_v32, 1 }
 0x3f2   :  { %875 = vmatmul.mubr.bf16.vlgmr.msra.gmra.mrb[12].mxu0 %v840_v34  ;;  %916 = vmatmul.mubr.bf16.vlgmr.msra.gmra.mrb[20].mxu1 %v840_v34 }
 0x3f3   :  { %974 = vmatpush1.bf16.msra.mxu0 %v2187_v3  ;;  %1015 = vmatpush1.bf16.msra.mxu1 %v2258_v41 }
 0x3f4   :  { %975 = vmatprep.subr.bf16.mxu0 %v2189_v4  ;;  %1016 = vmatprep.subr.bf16.mxu1 %v2261_v42 }
 0x3f5   :  { %1005 = vmatprep.mubr.bf16.mxu0 %v2097_v0  ;;  %1046 = vmatprep.mubr.bf16.mxu1 %v2097_v0 }
 0x3f7   :  { %976 = vmatpush1.bf16.msra.mxu0 %v2193_v5  ;;  %1017 = vmatpush1.bf16.msra.mxu1 %v2265_v43 }
 0x3f8   :  { %977 = vmatprep.subr.bf16.mxu0 %v2196_v6  ;;  %1018 = vmatprep.subr.bf16.mxu1 %v2269_v44 }
 0x3fb   :  { %978 = vmatpush1.bf16.msra.mxu0 %v2198_v9  ;;  %1019 = vmatpush1.bf16.msra.mxu1 %v2272_v45 }
 0x3fc   :  { %979 = vmatprep.subr.bf16.mxu0 %v2202_v11  ;;  %1020 = vmatprep.subr.bf16.mxu1 %v2275_v46 }
 0x3ff   :  { %980 = vmatpush1.bf16.msra.mxu0 %v2204_v13  ;;  %1021 = vmatpush1.bf16.msra.mxu1 %v2278_v47 }
 0x400   :  { %981 = vmatprep.subr.bf16.mxu0 %v2207_v15  ;;  %1022 = vmatprep.subr.bf16.mxu1 %v2281_v48 }
 0x403   :  { %982 = vmatpush1.bf16.msra.mxu0 %v2211_v18  ;;  %1023 = vmatpush1.bf16.msra.mxu1 %v2284_v49 }
 0x404   :  { %983 = vmatprep.subr.bf16.mxu0 %v2214_v19  ;;  %1024 = vmatprep.subr.bf16.mxu1 %v2287_v50 }
 0x407   :  { %984 = vmatpush1.bf16.msra.mxu0 %v2217_v22  ;;  %1025 = vmatpush1.bf16.msra.mxu1 %v2290_v51 }
 0x408   :  { %985 = vmatprep.subr.bf16.mxu0 %v2220_v23  ;;  %1026 = vmatprep.subr.bf16.mxu1 %v2293_v52 }
 0x40b   :  { %986 = vmatpush1.bf16.msra.mxu0 %v2222_v24  ;;  %1027 = vmatpush1.bf16.msra.mxu1 %v2296_v53 }
 0x40c   :  { %987 = vmatprep.subr.bf16.mxu0 %v2225_v25  ;;  %1028 = vmatprep.subr.bf16.mxu1 %v2299_v54 }
 0x40f   :  { %988 = vmatpush1.bf16.msra.mxu0 %v2228_v26  ;;  %1029 = vmatpush1.bf16.msra.mxu1 %v2302_v55 }
 0x410   :  { %1102 = vmatprep.subr.bf16.mxu0 %v2185_v2  ;;  %1143 = vmatprep.subr.bf16.mxu1 %v2256_v40 }
 0x4c5   :  { %v876_v3 = vpop.f32.mrb[12].mxu0  ;;  %v917_v4 = vpop.f32.mrb[20].mxu1 }
 0x4c6   :  { %v928_v5 = vrot.slane %v876_v3, 5  ;;  %v878_v61 = vpop.f32.mrb[13].mxu0  ;;  %v919_v35 = vpop.f32.mrb[21].mxu1  ;;  %v930_v2 = vrot.slane %v917_v4, 5 }
 0x4c7   :  { %v929_v36 = vrot.slane %v878_v61, 5  ;;  %v880_v37 = vpop.f32.mrb[14].mxu0  ;;  %v921_v38 = vpop.f32.mrb[22].mxu1  ;;  %v931_v1 = vrot.slane %v919_v35, 5 }
 0x4c8   :  { %v936_v39 = vadd.f32 %v928_v5, %v2329_v10  ;;  %v881_v58 = vpop.f32.mrb[15].mxu0  ;;  %v922_v59 = vpop.f32.mrb[23].mxu1  ;;  %v938_v7 = vadd.f32 %v930_v2, %v2333_v31 }
 0x4c9   :  { %v937_v60 = vadd.f32 %v929_v36, %v2331_v14  ;;  %v939_v8 = vadd.f32 %v931_v1, %v2335_v33  ;;  %v2470_v58 = vld [vmem:[#allocation5] ss:$16 sps:$4 sm:$0xff]  }
 0x4ca   :  { %v1689_v62 = vmul.f32 -1.442695, %v936_v39  ;;  %v1691_v29 = vmul.f32 -1.442695, %v938_v7  ;;  %v2480_v59 = vld [vmem:[#allocation5 + $0x20] ss:$16 sps:$4 sm:$0xff]  }
 0x4cb   :  { %v1690_v63 = vmul.f32 -1.442695, %v937_v60 }
 0x4cc   :  { %1881 = vpow2.f32 %v1689_v62 }
 0x4cd   :  { %1883 = vpow2.f32 %v1690_v63 }
 0x4ce   :  { %1885 = vtanh.f32 %v939_v8 }
 0x4cf   :  { %1887 = vpow2.f32 %v1691_v29 }
 0x4d6   :  { %v1882_v57 = vpop.eup %1881 }
 0x4d7   :  { %v949_v12 = vadd.f32 1.0, %v1882_v57  ;;  %v1884_v56 = vpop.eup %1883 }
 0x4d8   :  { %v950_v16 = vadd.f32 1.0, %v1884_v56  ;;  %v1886_v17 = vpop.eup %1885 }
 0x4d9   :  { %1889 = vrcp.f32 %v949_v12  ;;  %v1888_v21 = vpop.eup %1887 }
 0x4da   :  { %1891 = vrcp.f32 %v950_v16  ;;  %v951_v3 = vadd.f32 1.0, %v1888_v21 }
 0x4dc   :  { %1893 = vrcp.f32 %v951_v3 }
 0x4e3   :  { %v1890_v28 = vpop.eup %1889 }
 0x4e4   :  { %v963_v32 = vmul.f32 %v1890_v28, %v1886_v17  ;;  %v1892_v34 = vpop.eup %1891 }
 0x4e5   :  { %v962_v4 = vmul.f32 %v1892_v34, %v960_v27 }
 0x4e6   :  { %v1894_v61 = vpop.eup %1893 }
 0x4e7   :  { %v2467_v5 = vadd.f32 %v963_v32, %v962_v4 }
 0x4e9   :  { %1895 = vtanh.f32 %v2467_v5  ;;  %v1091_v27 = vrot.slane %v2467_v5, 7  ;;  %v2528_v5 = vld [vmem:[#allocation5 + $0x44] ss:$16 sps:$4 sm:$0xff]  }
 0x4f3   :  { %v1896_v35 = vpop.eup %1895 }
 0x4f4   :  { %v966_v36 = vmul.f32 %v1896_v35, %v1894_v61 }
 0x4f6   :  { %v967_v37 = vpack.c.bf16 %v966_v36, %v966_v36 }
 0x4f8   :  { %v969_v38 = vshrl.u32 %v967_v37, 16 }
 0x4fa   :  { %v971_v39 = vrot.slane %v969_v38, 1 }
 0x4fc   :  { %1006 = vmatmul.mubr.bf16.vlgmr.msra.gmra.mrb[16].mxu0 %v971_v39  ;;  %1047 = vmatmul.mubr.bf16.vlgmr.msra.gmra.mrb[24].mxu1 %v971_v39 }
 0x4fd   :  { %1103 = vmatpush1.bf16.msra.mxu0 %v2470_v58  ;;  %1144 = vmatpush1.bf16.msra.mxu1 %v2258_v41 }
 0x4fe   :  { %1104 = vmatprep.subr.bf16.mxu0 %v2474_v20  ;;  %1145 = vmatprep.subr.bf16.mxu1 %v2261_v42 }
 0x4ff   :  { %1134 = vmatprep.mubr.bf16.mxu0 %v2097_v0  ;;  %1175 = vmatprep.mubr.bf16.mxu1 %v2097_v0 }
 0x501   :  { %1105 = vmatpush1.bf16.msra.mxu0 %v2480_v59  ;;  %1146 = vmatpush1.bf16.msra.mxu1 %v2265_v43 }
 0x502   :  { %1106 = vmatprep.subr.bf16.mxu0 %v2196_v6  ;;  %1147 = vmatprep.subr.bf16.mxu1 %v2269_v44  ;;  %v2508_v6 = vld [vmem:[#allocation5 + $0x4] ss:$16 sps:$4 sm:$0xff]  }
 0x505   :  { %1107 = vmatpush1.bf16.msra.mxu0 %v2198_v9  ;;  %1148 = vmatpush1.bf16.msra.mxu1 %v2272_v45 }
 0x506   :  { %1108 = vmatprep.subr.bf16.mxu0 %v2202_v11  ;;  %1149 = vmatprep.subr.bf16.mxu1 %v2275_v46 }
 0x509   :  { %1109 = vmatpush1.bf16.msra.mxu0 %v2204_v13  ;;  %1150 = vmatpush1.bf16.msra.mxu1 %v2278_v47 }
 0x50a   :  { %1110 = vmatprep.subr.bf16.mxu0 %v2207_v15  ;;  %1151 = vmatprep.subr.bf16.mxu1 %v2281_v48 }
 0x50d   :  { %1111 = vmatpush1.bf16.msra.mxu0 %v2211_v18  ;;  %1152 = vmatpush1.bf16.msra.mxu1 %v2284_v49 }
 0x50e   :  { %1112 = vmatprep.subr.bf16.mxu0 %v2214_v19  ;;  %1153 = vmatprep.subr.bf16.mxu1 %v2287_v50 }
 0x511   :  { %1113 = vmatpush1.bf16.msra.mxu0 %v2217_v22  ;;  %1154 = vmatpush1.bf16.msra.mxu1 %v2290_v51 }
 0x512   :  { %1114 = vmatprep.subr.bf16.mxu0 %v2220_v23  ;;  %1155 = vmatprep.subr.bf16.mxu1 %v2293_v52 }
 0x515   :  { %1115 = vmatpush1.bf16.msra.mxu0 %v2222_v24  ;;  %1156 = vmatpush1.bf16.msra.mxu1 %v2296_v53 }
 0x516   :  { %1116 = vmatprep.subr.bf16.mxu0 %v2225_v25  ;;  %1157 = vmatprep.subr.bf16.mxu1 %v2299_v54 }
 0x519   :  { %1117 = vmatpush1.bf16.msra.mxu0 %v2228_v26  ;;  %1158 = vmatpush1.bf16.msra.mxu1 %v2302_v55 }
 0x51a   :  { %1233 = vmatprep.subr.bf16.mxu0 %v2508_v6  ;;  %1274 = vmatprep.subr.bf16.mxu1 %v2256_v40 }
 0x5cf   :  { %v1007_v9 = vpop.f32.mrb[16].mxu0  ;;  %v1048_v11 = vpop.f32.mrb[24].mxu1 }
 0x5d0   :  { %v1059_v13 = vrot.slane %v1007_v9, 4  ;;  %v1009_v15 = vpop.f32.mrb[17].mxu0  ;;  %v1050_v18 = vpop.f32.mrb[25].mxu1  ;;  %v1061_v2 = vrot.slane %v1048_v11, 4  ;;  %v2532_v9 = vld [vmem:[#allocation5 + $0x40] ss:$16 sps:$4 sm:$0xff]  }
 0x5d1   :  { %v1060_v19 = vrot.slane %v1009_v15, 4  ;;  %v1011_v22 = vpop.f32.mrb[18].mxu0  ;;  %v1052_v23 = vpop.f32.mrb[26].mxu1  ;;  %v1062_v1 = vrot.slane %v1050_v18, 4 }
 0x5d2   :  { %v1067_v24 = vadd.f32 %v1059_v13, %v2329_v10  ;;  %v1012_v25 = vpop.f32.mrb[19].mxu0  ;;  %v1053_v26 = vpop.f32.mrb[27].mxu1  ;;  %v1069_v7 = vadd.f32 %v1061_v2, %v2333_v31 }
 0x5d3   :  { %v1068_v60 = vadd.f32 %v1060_v19, %v2331_v14  ;;  %v1070_v8 = vadd.f32 %v1062_v1, %v2335_v33 }
 0x5d4   :  { %v1692_v62 = vmul.f32 -1.442695, %v1067_v24  ;;  %v1694_v29 = vmul.f32 -1.442695, %v1069_v7 }
 0x5d5   :  { %v1693_v63 = vmul.f32 -1.442695, %v1068_v60 }
 0x5d6   :  { %1897 = vpow2.f32 %v1692_v62 }
 0x5d7   :  { %1899 = vpow2.f32 %v1693_v63 }
 0x5d8   :  { %1901 = vtanh.f32 %v1070_v8 }
 0x5d9   :  { %1903 = vpow2.f32 %v1694_v29 }
 0x5e0   :  { %v1898_v57 = vpop.eup %1897 }
 0x5e1   :  { %v1080_v12 = vadd.f32 1.0, %v1898_v57  ;;  %v1900_v56 = vpop.eup %1899 }
 0x5e2   :  { %v1081_v16 = vadd.f32 1.0, %v1900_v56  ;;  %v1902_v17 = vpop.eup %1901 }
 0x5e3   :  { %1905 = vrcp.f32 %v1080_v12  ;;  %v1904_v21 = vpop.eup %1903 }
 0x5e4   :  { %1907 = vrcp.f32 %v1081_v16  ;;  %v1082_v3 = vadd.f32 1.0, %v1904_v21 }
 0x5e6   :  { %1909 = vrcp.f32 %v1082_v3 }
 0x5ed   :  { %v1906_v28 = vpop.eup %1905 }
 0x5ee   :  { %v1094_v32 = vmul.f32 %v1906_v28, %v1902_v17  ;;  %v1908_v34 = vpop.eup %1907 }
 0x5ef   :  { %v1093_v4 = vmul.f32 %v1908_v34, %v1091_v27 }
 0x5f0   :  { %v1910_v35 = vpop.eup %1909 }
 0x5f1   :  { %v2517_v61 = vadd.f32 %v1094_v32, %v1093_v4 }
 0x5f3   :  { %1911 = vtanh.f32 %v2517_v61  ;;  %v1220_v12 = vrot.slane %v2517_v61, 7  ;;  %v1981_v61 = vld [vmem:[#allocation5 + $0x8] ss:$16 sps:$4 sm:$0xff]  }
 0x5fd   :  { %v1912_v36 = vpop.eup %1911 }
 0x5fe   :  { %v1097_v37 = vmul.f32 %v1912_v36, %v1910_v35  ;;  %v1982_v36 = vld [vmem:[#allocation5 + $0x2c] ss:$16 sps:$4 sm:$0xff]  }
 0x600   :  { %v1098_v38 = vpack.c.bf16 %v1097_v37, %v1097_v37  ;;  %v1983_v37 = vld [vmem:[#allocation5 + $0x28] ss:$16 sps:$4 sm:$0xff]  }
 0x602   :  { %v1100_v39 = vrot.slane %v1098_v38, 2  ;;  %v1984_v38 = vld [vmem:[#allocation5 + $0x4c] ss:$16 sps:$4 sm:$0xff]  }
 0x604   :  { %1135 = vmatmul.mubr.bf16.vlgmr.msra.gmra.mrb[20].mxu0 %v1100_v39  ;;  %1176 = vmatmul.mubr.bf16.vlgmr.msra.gmra.mrb[28].mxu1 %v1100_v39  ;;  %v1987_v39 = vld [vmem:[#allocation5 + $0x68] ss:$16 sps:$4 sm:$0xff]  }
 0x605   :  { %1234 = vmatpush1.bf16.msra.mxu0 %v2470_v58  ;;  %1275 = vmatpush1.bf16.msra.mxu1 %v2258_v41  ;;  %v2536_v41 = vld [vmem:[#allocation5 + $0x64] ss:$16 sps:$4 sm:$0xff]  }
 0x606   :  { %1235 = vmatprep.subr.bf16.mxu0 %v2474_v20  ;;  %1276 = vmatprep.subr.bf16.mxu1 %v2261_v42  ;;  %v2540_v42 = vld [vmem:[#allocation5 + $0x60] ss:$16 sps:$4 sm:$0xff]  }
 0x607   :  { %1265 = vmatprep.mubr.bf16.mxu0 %v2097_v0  ;;  %1306 = vmatprep.mubr.bf16.mxu1 %v2097_v0 }
 0x609   :  { %1236 = vmatpush1.bf16.msra.mxu0 %v2480_v59  ;;  %1277 = vmatpush1.bf16.msra.mxu1 %v2265_v43  ;;  %v2544_v43 = vld [vmem:[#allocation5 + $0x84] ss:$16 sps:$4 sm:$0xff]  }
 0x60a   :  { %1237 = vmatprep.subr.bf16.mxu0 %v2528_v5  ;;  %1278 = vmatprep.subr.bf16.mxu1 %v2269_v44  ;;  %v2548_v44 = vld [vmem:[#allocation5 + $0x80] ss:$16 sps:$4 sm:$0xff]  }
 0x60d   :  { %1238 = vmatpush1.bf16.msra.mxu0 %v2532_v9  ;;  %1279 = vmatpush1.bf16.msra.mxu1 %v2272_v45  ;;  %v2552_v45 = vld [vmem:[#allocation5 + $0xa4] ss:$16 sps:$4 sm:$0xff]  }
 0x60e   :  { %1239 = vmatprep.subr.bf16.mxu0 %v2536_v41  ;;  %1280 = vmatprep.subr.bf16.mxu1 %v2275_v46  ;;  %v2556_v46 = vld [vmem:[#allocation5 + $0xa0] ss:$16 sps:$4 sm:$0xff]  }
 0x611   :  { %1240 = vmatpush1.bf16.msra.mxu0 %v2540_v42  ;;  %1281 = vmatpush1.bf16.msra.mxu1 %v2278_v47  ;;  %v2560_v47 = vld [vmem:[#allocation5 + $0xc4] ss:$16 sps:$4 sm:$0xff]  }
 0x612   :  { %1241 = vmatprep.subr.bf16.mxu0 %v2544_v43  ;;  %1282 = vmatprep.subr.bf16.mxu1 %v2281_v48  ;;  %v2564_v48 = vld [vmem:[#allocation5 + $0xc0] ss:$16 sps:$4 sm:$0xff]  }
 0x615   :  { %1242 = vmatpush1.bf16.msra.mxu0 %v2548_v44  ;;  %1283 = vmatpush1.bf16.msra.mxu1 %v2284_v49  ;;  %v2568_v49 = vld [vmem:[#allocation5 + $0xe4] ss:$16 sps:$4 sm:$0xff]  }
 0x616   :  { %1243 = vmatprep.subr.bf16.mxu0 %v2552_v45  ;;  %1284 = vmatprep.subr.bf16.mxu1 %v2287_v50  ;;  %v2572_v50 = vld [vmem:[#allocation5 + $0xe0] ss:$16 sps:$4 sm:$0xff]  }
 0x619   :  { %1244 = vmatpush1.bf16.msra.mxu0 %v2556_v46  ;;  %1285 = vmatpush1.bf16.msra.mxu1 %v2290_v51 }
 0x61a   :  { %1245 = vmatprep.subr.bf16.mxu0 %v2560_v47  ;;  %1286 = vmatprep.subr.bf16.mxu1 %v2293_v52 }
 0x61d   :  { %1246 = vmatpush1.bf16.msra.mxu0 %v2564_v48  ;;  %1287 = vmatpush1.bf16.msra.mxu1 %v2296_v53 }
 0x61e   :  { %1247 = vmatprep.subr.bf16.mxu0 %v2568_v49  ;;  %1288 = vmatprep.subr.bf16.mxu1 %v2299_v54 }
 0x621   :  { %1248 = vmatpush1.bf16.msra.mxu0 %v2572_v50  ;;  %1289 = vmatpush1.bf16.msra.mxu1 %v2302_v55 }
 0x622   :  { %1362 = vmatprep.subr.bf16.mxu0 %v2508_v6  ;;  %1403 = vmatprep.subr.bf16.mxu1 %v2256_v40 }
 0x6d7   :  { %v1136_v51 = vpop.f32.mrb[20].mxu0  ;;  %v1177_v52 = vpop.f32.mrb[28].mxu1 }
 0x6d8   :  { %v1188_v11 = vrot.slane %v1136_v51, 3  ;;  %v1138_v53 = vpop.f32.mrb[21].mxu0  ;;  %v1179_v13 = vpop.f32.mrb[29].mxu1  ;;  %v1190_v6 = vrot.slane %v1177_v52, 3 }
 0x6d9   :  { %v1189_v15 = vrot.slane %v1138_v53, 3  ;;  %v1140_v18 = vpop.f32.mrb[22].mxu0  ;;  %v1181_v19 = vpop.f32.mrb[30].mxu1  ;;  %v1191_v40 = vrot.slane %v1179_v13, 3 }
 0x6da   :  { %v1196_v54 = vadd.f32 %v1188_v11, %v2329_v10  ;;  %v1141_v22 = vpop.f32.mrb[23].mxu0  ;;  %v1182_v23 = vpop.f32.mrb[31].mxu1  ;;  %v1198_v26 = vadd.f32 %v1190_v6, %v2333_v31 }
 0x6db   :  { %v1197_v24 = vadd.f32 %v1189_v15, %v2331_v14  ;;  %v1199_v60 = vadd.f32 %v1191_v40, %v2335_v33 }
 0x6dc   :  { %v1695_v25 = vmul.f32 -1.442695, %v1196_v54  ;;  %v1697_v62 = vmul.f32 -1.442695, %v1198_v26 }
 0x6dd   :  { %v1696_v55 = vmul.f32 -1.442695, %v1197_v24 }
 0x6de   :  { %1913 = vpow2.f32 %v1695_v25 }
 0x6df   :  { %1915 = vpow2.f32 %v1696_v55 }
 0x6e0   :  { %1917 = vtanh.f32 %v1199_v60 }
 0x6e1   :  { %1919 = vpow2.f32 %v1697_v62 }
 0x6e8   :  { %v1914_v63 = vpop.eup %1913 }
 0x6e9   :  { %v1209_v2 = vadd.f32 1.0, %v1914_v63  ;;  %v1916_v1 = vpop.eup %1915 }
 0x6ea   :  { %v1210_v7 = vadd.f32 1.0, %v1916_v1  ;;  %v1918_v8 = vpop.eup %1917 }
 0x6eb   :  { %1921 = vrcp.f32 %v1209_v2  ;;  %v1920_v29 = vpop.eup %1919 }
 0x6ec   :  { %1923 = vrcp.f32 %v1210_v7  ;;  %v1211_v17 = vadd.f32 1.0, %v1920_v29 }
 0x6ee   :  { %1925 = vrcp.f32 %v1211_v17 }
 0x6f5   :  { %v1922_v57 = vpop.eup %1921 }
 0x6f6   :  { %v1223_v56 = vmul.f32 %v1922_v57, %v1918_v8  ;;  %v1924_v16 = vpop.eup %1923 }
 0x6f7   :  { %v1222_v21 = vmul.f32 %v1924_v16, %v1220_v12 }
 0x6f8   :  { %v1926_v27 = vpop.eup %1925 }
 0x6f9   :  { %v2583_v28 = vadd.f32 %v1223_v56, %v1222_v21 }
 0x6fb   :  { %1927 = vtanh.f32 %v2583_v28  ;;  %v1351_v2 = vrot.slane %v2583_v28, 7  ;;  %v1826_v28 = vld [vmem:[#allocation7 + $0x8] sm:$0xff]  }
 0x705   :  { %v1928_v32 = vpop.eup %1927 }
 0x706   :  { %v1226_v34 = vmul.f32 %v1928_v32, %v1926_v27  ;;  %v1825_v27 = vld [vmem:[#allocation7] sm:$0xff]   ;;  %v1827_v32 = vld [vmem:[#allocation7 + $0x10] sm:$0xff]  }
 0x708   :  { %v1227_v3 = vpack.c.bf16 %v1226_v34, %v1226_v34  ;;  %v1828_v34 = vld [vmem:[#allocation7 + $0x18] sm:$0xff]  }
 0x70a   :  { %v1229_v4 = vshrl.u32 %v1227_v3, 16  ;;  %v1829_v3 = vld [vmem:[#allocation7 + $0x20] sm:$0xff]  }
 0x70c   :  { %v1231_v35 = vrot.slane %v1229_v4, 2  ;;  %v1830_v4 = vld [vmem:[#allocation7 + $0x28] sm:$0xff]  }
 0x70e   :  { %1266 = vmatmul.mubr.bf16.vlgmr.msra.gmra.mrb[24].mxu0 %v1231_v35  ;;  %1307 = vmatmul.mubr.bf16.vlgmr.msra.gmra.mrb[32].mxu1 %v1231_v35  ;;  %v1831_v35 = vld [vmem:[#allocation7 + $0x30] sm:$0xff]  }
 0x70f   :  { %1363 = vmatpush1.bf16.msra.mxu0 %v2470_v58  ;;  %1404 = vmatpush1.bf16.msra.mxu1 %v1981_v61  ;;  %v1985_v58 = vld [vmem:[#allocation5 + $0x48] ss:$16 sps:$4 sm:$0xff]  }
 0x710   :  { %1364 = vmatprep.subr.bf16.mxu0 %v2474_v20  ;;  %1405 = vmatprep.subr.bf16.mxu1 %v1982_v36  ;;  %v1986_v20 = vld [vmem:[#allocation5 + $0x6c] ss:$16 sps:$4 sm:$0xff]  }
 0x711   :  { %1394 = vmatprep.mubr.bf16.mxu0 %v2097_v0  ;;  %1435 = vmatprep.mubr.bf16.mxu1 %v2097_v0  ;;  %v1988_v0 = vld [vmem:[#allocation5 + $0x8c] ss:$16 sps:$4 sm:$0xff]  }
 0x712   :  { %v1832_v61 = vld [vmem:[#allocation7 + $0x38] sm:$0xff]  }
 0x713   :  { %1365 = vmatpush1.bf16.msra.mxu0 %v2480_v59  ;;  %1406 = vmatpush1.bf16.msra.mxu1 %v1983_v37  ;;  %v1989_v59 = vld [vmem:[#allocation5 + $0x88] ss:$16 sps:$4 sm:$0xff]  }
 0x714   :  { %1366 = vmatprep.subr.bf16.mxu0 %v2528_v5  ;;  %1407 = vmatprep.subr.bf16.mxu1 %v1984_v38  ;;  %v1990_v5 = vld [vmem:[#allocation5 + $0xac] ss:$16 sps:$4 sm:$0xff]  }
 0x717   :  { %1367 = vmatpush1.bf16.msra.mxu0 %v2532_v9  ;;  %1408 = vmatpush1.bf16.msra.mxu1 %v1985_v58  ;;  %v1991_v9 = vld [vmem:[#allocation5 + $0xa8] ss:$16 sps:$4 sm:$0xff]  }
 0x718   :  { %1368 = vmatprep.subr.bf16.mxu0 %v2536_v41  ;;  %1409 = vmatprep.subr.bf16.mxu1 %v1986_v20  ;;  %v1992_v41 = vld [vmem:[#allocation5 + $0xcc] ss:$16 sps:$4 sm:$0xff]  }
 0x71b   :  { %1369 = vmatpush1.bf16.msra.mxu0 %v2540_v42  ;;  %1410 = vmatpush1.bf16.msra.mxu1 %v1987_v39  ;;  %v1993_v42 = vld [vmem:[#allocation5 + $0xc8] ss:$16 sps:$4 sm:$0xff]  }
 0x71c   :  { %1370 = vmatprep.subr.bf16.mxu0 %v2544_v43  ;;  %1411 = vmatprep.subr.bf16.mxu1 %v1988_v0  ;;  %v1994_v43 = vld [vmem:[#allocation5 + $0xec] ss:$16 sps:$4 sm:$0xff]  }
 0x71f   :  { %1371 = vmatpush1.bf16.msra.mxu0 %v2548_v44  ;;  %1412 = vmatpush1.bf16.msra.mxu1 %v1989_v59  ;;  %v1995_v44 = vld [vmem:[#allocation5 + $0xe8] ss:$16 sps:$4 sm:$0xff]  }
 0x720   :  { %1372 = vmatprep.subr.bf16.mxu0 %v2552_v45  ;;  %1413 = vmatprep.subr.bf16.mxu1 %v1990_v5 }
 0x723   :  { %1373 = vmatpush1.bf16.msra.mxu0 %v2556_v46  ;;  %1414 = vmatpush1.bf16.msra.mxu1 %v1991_v9 }
 0x724   :  { %1374 = vmatprep.subr.bf16.mxu0 %v2560_v47  ;;  %1415 = vmatprep.subr.bf16.mxu1 %v1992_v41 }
 0x727   :  { %1375 = vmatpush1.bf16.msra.mxu0 %v2564_v48  ;;  %1416 = vmatpush1.bf16.msra.mxu1 %v1993_v42 }
 0x728   :  { %1376 = vmatprep.subr.bf16.mxu0 %v2568_v49  ;;  %1417 = vmatprep.subr.bf16.mxu1 %v1994_v43 }
 0x72b   :  { %1377 = vmatpush1.bf16.msra.mxu0 %v2572_v50  ;;  %1418 = vmatpush1.bf16.msra.mxu1 %v1995_v44 }
 0x72c   :  { %1721 = vmatprep.subr.bf16.mxu0 %v2098_v30 }
 0x7e1   :  { %v1267_v45 = vpop.f32.mrb[24].mxu0  ;;  %v1308_v46 = vpop.f32.mrb[32].mxu1 }
 0x7e2   :  { %v1319_v51 = vrot.slane %v1267_v45, 2  ;;  %v1269_v47 = vpop.f32.mrb[25].mxu0  ;;  %v1310_v52 = vpop.f32.mrb[33].mxu1  ;;  %v1321_v54 = vrot.slane %v1308_v46, 2 }
 0x7e3   :  { %v1320_v11 = vrot.slane %v1269_v47, 2  ;;  %v1271_v53 = vpop.f32.mrb[26].mxu0  ;;  %v1312_v48 = vpop.f32.mrb[34].mxu1  ;;  %v1322_v22 = vrot.slane %v1310_v52, 2 }
 0x7e4   :  { %v1327_v13 = vadd.f32 %v1319_v51, %v2329_v10  ;;  %v1272_v15 = vpop.f32.mrb[27].mxu0  ;;  %v1313_v49 = vpop.f32.mrb[35].mxu1  ;;  %v1329_v23 = vadd.f32 %v1321_v54, %v2333_v31 }
 0x7e5   :  { %v1328_v18 = vadd.f32 %v1320_v11, %v2331_v14  ;;  %v1330_v24 = vadd.f32 %v1322_v22, %v2335_v33 }
 0x7e6   :  { %v1698_v19 = vmul.f32 -1.442695, %v1327_v13  ;;  %v1700_v25 = vmul.f32 -1.442695, %v1329_v23 }
 0x7e7   :  { %v1699_v50 = vmul.f32 -1.442695, %v1328_v18 }
 0x7e8   :  { %1929 = vpow2.f32 %v1698_v19 }
 0x7e9   :  { %1931 = vpow2.f32 %v1699_v50 }
 0x7ea   :  { %1933 = vtanh.f32 %v1330_v24 }
 0x7eb   :  { %1935 = vpow2.f32 %v1700_v25 }
 0x7f2   :  { %v1930_v55 = vpop.eup %1929 }
 0x7f3   :  { %v1340_v6 = vadd.f32 1.0, %v1930_v55  ;;  %v1932_v40 = vpop.eup %1931  ;;  %v1504_v55 = vld [vmem:[%s2645_s5] sm:$0x1]  ;;  %s2100_s5 = smov [#allocation8]  }
 0x7f4   :  { %v1341_v26 = vadd.f32 1.0, %v1932_v40  ;;  %v1934_v60 = vpop.eup %1933  ;;  %s1619_s14 = sshll.u32 %s2100_s5, 4  ;;  %s1620_s14 = int_to_ptr.vmem [resolvable:$true] %s1619_s14 }
 0x7f5   :  { %1937 = vrcp.f32 %v1340_v6  ;;  %v1936_v62 = vpop.eup %1935  ;;  %s2062_s15 = scalar_lea.vmem %s1620_s14, 16  ;;  %s2066_s16 = scalar_lea.vmem %s1620_s14, 32 }
 0x7f6   :  { %1939 = vrcp.f32 %v1341_v26  ;;  %v1342_v8 = vadd.f32 1.0, %v1936_v62  ;;  %p2063_p10 = scmp.ne.s32.totalorder %s1620_s14, %s2062_s15  ;;  %p2067_p11 = scmp.lt.s32.totalorder %s1620_s14, %s1620_s14 }
 0x7f7   :  { %p2068_p12 = scmp.lt.s32.totalorder %s2066_s16, %s2062_s15 }
 0x7f8   :  { %1941 = vrcp.f32 %v1342_v8 }
 0x7f9   :  { %p2069_p13 = por %p2068_p12, %p2067_p11 }
 0x7fb   :  { %p2070_p0 = pnand %p2069_p13, %p2063_p10 }
 0x7ff   :  { %v1938_v63 = vpop.eup %1937 }
 0x800   :  { %v1354_v1 = vmul.f32 %v1938_v63, %v1934_v60  ;;  %v1940_v7 = vpop.eup %1939 }
 0x801   :  { %v1353_v29 = vmul.f32 %v1940_v7, %v1351_v2 }
 0x802   :  { %v1942_v12 = vpop.eup %1941 }
 0x803   :  { %v2609_v57 = vadd.f32 %v1354_v1, %v1353_v29 }
 0x805   :  { %1943 = vtanh.f32 %v2609_v57  ;;  %v1480_v15 = vrot.slane %v2609_v57, 7 }
 0x80f   :  { %v1944_v56 = vpop.eup %1943 }
 0x810   :  { %v1357_v16 = vmul.f32 %v1944_v56, %v1942_v12 }
 0x812   :  { %v1358_v17 = vpack.c.bf16 %v1357_v16, %v1357_v16 }
 0x814   :  { %v1360_v21 = vrot.slane %v1358_v17, 3 }
 0x816   :  { %1395 = vmatmul.mubr.bf16.vlgmr.msra.gmra.mrb[28].mxu0 %v1360_v21  ;;  %1436 = vmatmul.mubr.bf16.vlgmr.msra.gmra.mrb[36].mxu1 %v1360_v21 }
 0x817   :  { %1722 = vmatpush3.bf16.msra.mxu0 %v1825_v27  ;;  %1737 = vmatprep.mubr.msk.bf16.mxu0 %vm2099_vm2, %v2098_v30 }
 0x818   :  { %1723 = vmatprep.subr.bf16.mxu0 %v2098_v30 }
 0x81b   :  { %1724 = vmatpush3.bf16.msra.mxu0 %v1826_v28 }
 0x81c   :  { %1725 = vmatprep.subr.bf16.mxu0 %v2098_v30 }
 0x81f   :  { %1726 = vmatpush3.bf16.msra.mxu0 %v1827_v32 }
 0x820   :  { %1727 = vmatprep.subr.bf16.mxu0 %v2098_v30 }
 0x823   :  { %1728 = vmatpush3.bf16.msra.mxu0 %v1828_v34 }
 0x824   :  { %1729 = vmatprep.subr.bf16.mxu0 %v2098_v30 }
 0x827   :  { %1730 = vmatpush3.bf16.msra.mxu0 %v1829_v3 }
 0x828   :  { %1731 = vmatprep.subr.bf16.mxu0 %v2098_v30 }
 0x82b   :  { %1732 = vmatpush3.bf16.msra.mxu0 %v1830_v4 }
 0x82c   :  { %1733 = vmatprep.subr.bf16.mxu0 %v2098_v30 }
 0x82f   :  { %1734 = vmatpush3.bf16.msra.mxu0 %v1831_v35 }
 0x830   :  { %1735 = vmatprep.subr.bf16.mxu0 %v2098_v30 }
 0x833   :  { %1736 = vmatpush3.bf16.msra.mxu0 %v1832_v61 }
 0x8e9   :  { %v1396_v36 = vpop.f32.mrb[28].mxu0  ;;  %v1437_v37 = vpop.f32.mrb[36].mxu1 }
 0x8ea   :  { %v1448_v38 = vrot.slane %v1396_v36, 1  ;;  %v1398_v58 = vpop.f32.mrb[29].mxu0  ;;  %v1439_v20 = vpop.f32.mrb[37].mxu1  ;;  %v1450_v45 = vrot.slane %v1437_v37, 1 }
 0x8eb   :  { %v1449_v39 = vrot.slane %v1398_v58, 1  ;;  %v1400_v0 = vpop.f32.mrb[30].mxu0  ;;  %v1441_v59 = vpop.f32.mrb[38].mxu1  ;;  %v1451_v30 = vrot.slane %v1439_v20, 1 }
 0x8ec   :  { %v1456_v5 = vadd.f32 %v1448_v38, %v2329_v10  ;;  %v1401_v9 = vpop.f32.mrb[31].mxu0  ;;  %v1442_v41 = vpop.f32.mrb[39].mxu1  ;;  %v1458_v46 = vadd.f32 %v1450_v45, %v2333_v31 }
 0x8ed   :  { %v1457_v42 = vadd.f32 %v1449_v39, %v2331_v14  ;;  %v1459_v51 = vadd.f32 %v1451_v30, %v2335_v33 }
 0x8ee   :  { %v1701_v43 = vmul.f32 -1.442695, %v1456_v5  ;;  %v1703_v47 = vmul.f32 -1.442695, %v1458_v46 }
 0x8ef   :  { %v1702_v44 = vmul.f32 -1.442695, %v1457_v42 }
 0x8f0   :  { %1945 = vpow2.f32 %v1701_v43 }
 0x8f1   :  { %1947 = vpow2.f32 %v1702_v44 }
 0x8f2   :  { %1949 = vtanh.f32 %v1459_v51 }
 0x8f3   :  { %1951 = vpow2.f32 %v1703_v47 }
 0x8fa   :  { %v1946_v52 = vpop.eup %1945 }
 0x8fb   :  { %v1469_v11 = vadd.f32 1.0, %v1946_v52  ;;  %v1948_v53 = vpop.eup %1947 }
 0x8fc   :  { %v1470_v10 = vadd.f32 1.0, %v1948_v53  ;;  %v1950_v14 = vpop.eup %1949 }
 0x8fd   :  { %1953 = vrcp.f32 %v1469_v11  ;;  %v1952_v48 = vpop.eup %1951 }
 0x8fe   :  { %1955 = vrcp.f32 %v1470_v10  ;;  %v1471_v19 = vadd.f32 1.0, %v1952_v48 }
 0x900   :  { %1957 = vrcp.f32 %v1471_v19 }
 0x907   :  { %v1954_v13 = vpop.eup %1953 }
 0x908   :  { %v1483_v49 = vmul.f32 %v1954_v13, %v1950_v14  ;;  %v1956_v18 = vpop.eup %1955 }
 0x909   :  { %v1482_v31 = vmul.f32 %v1956_v18, %v1480_v15 }
 0x90a   :  { %v1958_v33 = vpop.eup %1957 }
 0x90b   :  { %v1484_v50 = vadd.f32 %v1483_v49, %v1482_v31 }
 0x90d   :  { %1959 = vtanh.f32 %v1484_v50 }
 0x917   :  { %v1960_v54 = vpop.eup %1959 }
 0x918   :  { %v1486_v22 = vmul.f32 %v1960_v54, %v1958_v33 }
 0x91a   :  { %v1487_v23 = vpack.c.bf16 %v1486_v22, %v1486_v22 }
 0x91c   :  { %v1506_v24 = vshrl.u32 %v1487_v23, 16 }
 0x91e   :  { %v1508_v25 = vrot.slane %v1506_v24, 3 }
 0x920   :  { %1738 = vmatmul.mubr.bf16.vlgmr.msra.gmra.mrb[32].mxu0 %v1508_v25 }
 0x9f3   :  { %v1592_v6 = vpop.f32.mrb[32].mxu0 }
 0x9f4   :  { %v1593_v40 = vadd.f32 %v1592_v6, %v1504_v55  ;;  %v1739_v26 = vpop.f32.mrb[33].mxu0 }
 0x9f5   :  { %v1595_v60 = vpop.f32.mrb[34].mxu0 }
 0x9f6   :  { %v1740_v62 = vpop.f32.mrb[35].mxu0  ;;  %v1599_v63 = vsel %vm1598_vm3, %v1593_v40, -inf }
 0x9f7   :  { %1600 = vmax.xlane.f32.xlu0 %v1599_v63 }
 0xa84   :  { %v1601_v2 = vpop.xlane.xlu0 %1600 }
 0xa85   :  { %v1602_v1 = vsub.f32 %v1593_v40, %v1601_v2 }
 0xa87   :  { %v1603_v7 = vmul.f32 1.442695, %v1602_v1 }
 0xa89   :  { %1961 = vpow2.f32 %v1603_v7 }
 0xa93   :  { %v1962_v8 = vpop.eup %1961 }
 0xa94   :  { %v1605_v29 = vsel %vm1598_vm3, %v1962_v8, 0.0 }
 0xa95   :  { %1606 = vadd.xlane.f32.xlu1 %v1605_v29 }
 0xb22   :  { %v1607_v57 = vpop.xlane.xlu1 %1606 }
 0xb23   :  { %1963 = vlog2.f32 %v1607_v57 }
 0xb2d   :  { %v1964_v12 = vpop.eup %1963 }
 0xb2e   :  { %v1609_v56 = vmul.f32 0.6931472, %v1964_v12 }
 0xb30   :  { %v1610_v16 = vadd.f32 %v1609_v56, %v1601_v2 }
 0xb32   :  { %v1611_v17 = vsub.f32 %v1593_v40, %v1610_v16 }
 0xb34   :  { %1612 = vst [vmem:[#allocation8] sm:$0x1] %v1611_v17 }
 0xb35   :  { %2073 = shalt.err (!%p2070_p0)
}
 0xb36   :  { %s2074_s19 = scalar_lea.hbm %s2646_s6, 16 }
 0xb37   :  { %p2075_p1 = scmp.ne.s32.totalorder %s2646_s6, %s2074_s19  ;;  %p2078_p2 = scmp.lt.u32.totalorder %s2074_s19, %s2646_s6 }
 0xb39   :  { %p2080_p3 = pnand %p2078_p2, %p2075_p1 }
 0xb3b   :  { %2083 = shalt.err (!%p2080_p3)
}
 0xb3c   :  { %1622 = dma.vmem_to_hbm [thread:$0]  %s1620_s14, 16, %s2646_s6, [#allocation4]  }
 0xb3d   :  { %2088 = dma.done.wait [#allocation4], 16  }
 0xb3e   :  { %2089 = vsyncadd [#allocation4], 4294967280 }
 0xb3f   :  { %1626 = vsyncpa [#allocation3], 1 }
 0xb40   :  { %1627 = vsyncpa [#allocation6], 1 }
 0xb41   :  { %1628 = vsyncpa [#allocation4], 1 }

</bundles_post_ra>
